<compile_context>
chip_gen: v5e
topology: v5e:2x2
jax: 0.10.0
libtpu: 0.0.40
codegen_flags: <defaults>
</compile_context>

<pallas_src>
import jax
import jax.numpy as jnp
from jax.experimental import pallas as pl
from jax.experimental.pallas import tpu as pltpu

BN_EPS = 1e-5


# ------------------------------ fused kernel -------------------------------
def _alert_kernel(x_ref, w1_ref, p1_ref, w2_ref, p2_ref, w3_ref, p3_ref,
                  tail_ref, out_ref):
    x = x_ref[...].astype(jnp.float32)               # (N, C, H*W)
    hw = x.shape[-1]

    # Single pass over x: sum, sum-of-squares, max.
    s = jnp.sum(x, axis=-1)                          # (N, C)
    ssq = jnp.sum(x * x, axis=-1)                    # (N, C)
    mx = jnp.max(x, axis=-1)                         # (N, C)

    inv_hw = 1.0 / hw
    mean = s * inv_hw
    # torch.std default: unbiased (divide by HW - 1). Single-pass form; clamp
    # to 0 against FP cancellation.  Requires HW > 1.
    var = (ssq - s * s * inv_hw) * (1.0 / (hw - 1))
    std = jnp.sqrt(jnp.maximum(var, 0.0))

    # (N, 3C) fc1 input -> ONE MXU pass against the pre-folded (3C, nc) weight.
    stats = jnp.concatenate([mean, mx, std], axis=-1)

    def bn(h, g, b):
        # training-mode BatchNorm1d: single-pass batch stats, biased variance.
        inv_n = 1.0 / h.shape[0]
        mu = jnp.sum(h, axis=0, keepdims=True) * inv_n
        msq = jnp.sum(h * h, axis=0, keepdims=True) * inv_n
        v = jnp.maximum(msq - mu * mu, 0.0)
        return (h - mu) * jax.lax.rsqrt(v + BN_EPS) * g + b

    # Layer 1: fc1 + ReLU + bn1.  p1 rows: [fc bias, gamma, beta].
    p1 = p1_ref[...]
    h = jnp.dot(stats, w1_ref[...], preferred_element_type=jnp.float32) + p1[0:1, :]
    h = bn(jnp.maximum(h, 0.0), p1[1:2, :], p1[2:3, :])

    # Layer 2: fc2 + ReLU + bn2.
    p2 = p2_ref[...]
    h = jnp.dot(h, w2_ref[...], preferred_element_type=jnp.float32) + p2[0:1, :]
    h = bn(jnp.maximum(h, 0.0), p2[1:2, :], p2[2:3, :])

    # Layer 3: fc3 + ReLU + bn3.
    p3 = p3_ref[...]
    h = jnp.dot(h, w3_ref[...], preferred_element_type=jnp.float32) + p3[0:1, :]
    h = bn(jnp.maximum(h, 0.0), p3[1:2, :], p3[2:3, :])

    # Tail pack (1, 17): [w4 (12 lanes), b4, g4, be4, w5, b5].
    tail = tail_ref[...]
    # fc4 (12 -> 1) on the VPU: broadcast-mul + cross-lane reduce (no MXU).
    h = jnp.sum(h * tail[:, 0:12], axis=-1, keepdims=True) + tail[:, 12:13]
    h = bn(jnp.maximum(h, 0.0), tail[:, 13:14], tail[:, 14:15])
    # fc5 (1 -> 1): scalar affine + sigmoid (VPU/EUP).
    out_ref[...] = jax.nn.sigmoid(h * tail[:, 15:16] + tail[:, 16:17])


# ----------------------- one-time parameter preprocessing ------------------
def prepare_params(params, c):
    """Run ONCE at init: fold the 128x feature tiling into w1 and pack the
    small per-layer params, so the per-call forward touches only ~0.2 MiB."""
    (w1, b1, g1, be1,
     w2, b2, g2, be2,
     w3, b3, g3, be3,
     w4, b4, g4, be4,
     w5, b5) = params

    nc = w1.shape[1]
    reps = w1.shape[0] // (3 * c)                     # 128 copies in forward()
    # tile(x1, reps) @ w1 == x1 @ sum-of-row-blocks(w1)
    w1_eff = w1.reshape(reps, 3 * c, nc).sum(axis=0)  # (3C, nc)

    p1 = jnp.concatenate([b1, g1, be1], axis=0)       # (3, nc)
    p2 = jnp.concatenate([b2, g2, be2], axis=0)       # (3, nc//4)
    p3 = jnp.concatenate([b3, g3, be3], axis=0)       # (3, 12)
    tail = jnp.concatenate([w4.T, b4, g4, be4, w5, b5], axis=1)   # (1, 17)
    return (w1_eff, p1, w2, p2, w3, p3, tail)


# --------------------------------- forward ---------------------------------
@jax.jit
def alert_forward(x, prepped):
    n, c, h, w = x.shape
    x3d = x.reshape(n, c, h * w)                      # cast to f32 in-kernel
    w1_eff, p1, w2, p2, w3, p3, tail = prepped

    vmem = pl.BlockSpec(memory_space=pltpu.MemorySpace.VMEM)
    args = (x3d, w1_eff, p1, w2, p2, w3, p3, tail)
    # Single fused, grid-less call: BatchNorm couples all batch rows, and the
    # whole footprint fits comfortably in VMEM on all TPU generations.
    return pl.pallas_call(
        _alert_kernel,
        out_shape=jax.ShapeDtypeStruct((n, 1), jnp.float32),
        in_specs=[vmem] * len(args),
        out_specs=vmem,
    )(*args)


# --------------------------- parameter creation ----------------------------
def init_params(key, num_channels=384):
    dims = [
        (num_channels * 3, num_channels),        # fc1
        (num_channels, num_channels // 4),       # fc2
        (num_channels // 4, 12),                 # fc3
        (12, 1),                                 # fc4
        (1, 1),                                  # fc5
    ]
    params = []
    for i, (fin, fout) in enumerate(dims):
        key, kw, kb = jax.random.split(key, 3)
        bound = 1.0 / (fin ** 0.5)               # PyTorch Linear default init
        w = jax.random.uniform(kw, (fin, fout), jnp.float32, -bound, bound)
        b = jax.random.uniform(kb, (1, fout), jnp.float32, -bound, bound)
        params += [w, b]
        if i < 4:                                 # bn1..bn4 follow fc1..fc4
            params += [jnp.ones((1, fout), jnp.float32),
                       jnp.zeros((1, fout), jnp.float32)]
    return params


if __name__ == "__main__":
    # Input must have C = num_channels // 128 = 3 channels so that
    # 3*C*128 == num_channels*3 == fc1.in_features (module: Alert(16, 16)).
    N, C, H, W = 8, 3, 16, 16
    num_channels = 384

    key = jax.random.PRNGKey(0)
    kx, kp = jax.random.split(key)
    x = jax.random.normal(kx, (N, C, H, W), jnp.float32)
    params = init_params(kp, num_channels)

    prepped = prepare_params(params, C)          # one-time, outside the hot path

    out = alert_forward(x, prepped)
    jax.block_until_ready(out)
    assert out.shape == (N, 1)
    assert bool(jnp.all(jnp.isfinite(out)))
    print("KERNEL_OK")
</pallas_src>

<mosaic_0001>
module attributes {stable_mosaic.version = 11 : i64} {
  func.func @_alert_kernel(%arg0: memref<8x3x256xf32, #tpu.memory_space<vmem>>, %arg1: memref<9x384xf32, #tpu.memory_space<vmem>>, %arg2: memref<3x384xf32, #tpu.memory_space<vmem>>, %arg3: memref<384x96xf32, #tpu.memory_space<vmem>>, %arg4: memref<3x96xf32, #tpu.memory_space<vmem>>, %arg5: memref<96x12xf32, #tpu.memory_space<vmem>>, %arg6: memref<3x12xf32, #tpu.memory_space<vmem>>, %arg7: memref<1x17xf32, #tpu.memory_space<vmem>>, %arg8: memref<8x1xf32, #tpu.memory_space<vmem>>) attributes {dimension_semantics = [], scalar_prefetch = 0 : i64, scratch_operands = 0 : i64, tpu.core_type = #tpu.core_type<tc>} {
    %c0 = arith.constant 0 : index
    %c0_0 = arith.constant 0 : index
    %c0_1 = arith.constant 0 : index
    %0 = vector.load %arg0[%c0, %c0_0, %c0_1] : memref<8x3x256xf32, #tpu.memory_space<vmem>>, vector<8x3x256xf32>
    %cst = arith.constant dense<0.000000e+00> : vector<8x3xf32>
    %1 = vector.multi_reduction <add>, %0, %cst [2] : vector<8x3x256xf32> to vector<8x3xf32>
    %2 = arith.mulf %0, %0 : vector<8x3x256xf32>
    %cst_2 = arith.constant dense<0.000000e+00> : vector<8x3xf32>
    %3 = vector.multi_reduction <add>, %2, %cst_2 [2] : vector<8x3x256xf32> to vector<8x3xf32>
    %cst_3 = arith.constant dense<0xFF800000> : vector<8x3xf32>
    %4 = vector.multi_reduction <maximumf>, %0, %cst_3 [2] : vector<8x3x256xf32> to vector<8x3xf32>
    %cst_4 = arith.constant 3.906250e-03 : f32
    %5 = vector.broadcast %cst_4 : f32 to vector<8x3xf32>
    %6 = arith.mulf %1, %5 : vector<8x3xf32>
    %7 = arith.mulf %1, %1 : vector<8x3xf32>
    %cst_5 = arith.constant 3.906250e-03 : f32
    %8 = vector.broadcast %cst_5 : f32 to vector<8x3xf32>
    %9 = arith.mulf %7, %8 : vector<8x3xf32>
    %10 = arith.subf %3, %9 : vector<8x3xf32>
    %cst_6 = arith.constant 0.00392156886 : f32
    %11 = vector.broadcast %cst_6 : f32 to vector<8x3xf32>
    %12 = arith.mulf %10, %11 : vector<8x3xf32>
    %cst_7 = arith.constant 0.000000e+00 : f32
    %13 = vector.broadcast %cst_7 : f32 to vector<8x3xf32>
    %14 = arith.maximumf %12, %13 : vector<8x3xf32>
    %15 = math.sqrt %14 : vector<8x3xf32>
    %16 = tpu.concatenate %6, %4, %15 in 1 : vector<8x3xf32>, vector<8x3xf32>, vector<8x3xf32> -> vector<8x9xf32>
    %c0_8 = arith.constant 0 : index
    %c0_9 = arith.constant 0 : index
    %17 = vector.load %arg2[%c0_8, %c0_9] : memref<3x384xf32, #tpu.memory_space<vmem>>, vector<3x384xf32>
    %c0_10 = arith.constant 0 : index
    %c0_11 = arith.constant 0 : index
    %18 = vector.load %arg1[%c0_10, %c0_11] : memref<9x384xf32, #tpu.memory_space<vmem>>, vector<9x384xf32>
    %cst_12 = arith.constant dense<0.000000e+00> : vector<8x384xf32>
    %19 = tpu.matmul %16, %18, %cst_12 {dimension_numbers = #tpu.dot_dimension_numbers<[1], [0], [0], [1], [0, 0, 1, 1], [], []>} : vector<8x9xf32>, vector<9x384xf32>, vector<8x384xf32> -> vector<8x384xf32>
    %20 = vector.extract_strided_slice %17 {offsets = [0, 0], sizes = [1, 384], strides = [1, 1]} : vector<3x384xf32> to vector<1x384xf32>
    %21 = vector.broadcast %20 : vector<1x384xf32> to vector<8x384xf32>
    %22 = arith.addf %19, %21 : vector<8x384xf32>
    %cst_13 = arith.constant 0.000000e+00 : f32
    %23 = vector.broadcast %cst_13 : f32 to vector<8x384xf32>
    %24 = arith.maximumf %22, %23 : vector<8x384xf32>
    %25 = vector.extract_strided_slice %17 {offsets = [1, 0], sizes = [1, 384], strides = [1, 1]} : vector<3x384xf32> to vector<1x384xf32>
    %26 = vector.extract_strided_slice %17 {offsets = [2, 0], sizes = [1, 384], strides = [1, 1]} : vector<3x384xf32> to vector<1x384xf32>
    %cst_14 = arith.constant dense<0.000000e+00> : vector<384xf32>
    %27 = vector.multi_reduction <add>, %24, %cst_14 [0] : vector<8x384xf32> to vector<384xf32>
    %28 = vector.shape_cast %27 : vector<384xf32> to vector<1x384xf32>
    %cst_15 = arith.constant 1.250000e-01 : f32
    %29 = vector.broadcast %cst_15 : f32 to vector<1x384xf32>
    %30 = arith.mulf %28, %29 : vector<1x384xf32>
    %31 = arith.mulf %24, %24 : vector<8x384xf32>
    %cst_16 = arith.constant dense<0.000000e+00> : vector<384xf32>
    %32 = vector.multi_reduction <add>, %31, %cst_16 [0] : vector<8x384xf32> to vector<384xf32>
    %33 = vector.shape_cast %32 : vector<384xf32> to vector<1x384xf32>
    %cst_17 = arith.constant 1.250000e-01 : f32
    %34 = vector.broadcast %cst_17 : f32 to vector<1x384xf32>
    %35 = arith.mulf %33, %34 : vector<1x384xf32>
    %36 = arith.mulf %30, %30 : vector<1x384xf32>
    %37 = arith.subf %35, %36 : vector<1x384xf32>
    %cst_18 = arith.constant 0.000000e+00 : f32
    %38 = vector.broadcast %cst_18 : f32 to vector<1x384xf32>
    %39 = arith.maximumf %37, %38 : vector<1x384xf32>
    %40 = vector.broadcast %30 : vector<1x384xf32> to vector<8x384xf32>
    %41 = arith.subf %24, %40 : vector<8x384xf32>
    %cst_19 = arith.constant 9.99999974E-6 : f32
    %42 = vector.broadcast %cst_19 : f32 to vector<1x384xf32>
    %43 = arith.addf %39, %42 : vector<1x384xf32>
    %44 = math.rsqrt %43 : vector<1x384xf32>
    %45 = vector.broadcast %44 : vector<1x384xf32> to vector<8x384xf32>
    %46 = arith.mulf %41, %45 : vector<8x384xf32>
    %47 = vector.broadcast %25 : vector<1x384xf32> to vector<8x384xf32>
    %48 = arith.mulf %46, %47 : vector<8x384xf32>
    %49 = vector.broadcast %26 : vector<1x384xf32> to vector<8x384xf32>
    %50 = arith.addf %48, %49 : vector<8x384xf32>
    %c0_20 = arith.constant 0 : index
    %c0_21 = arith.constant 0 : index
    %51 = vector.load %arg4[%c0_20, %c0_21] : memref<3x96xf32, #tpu.memory_space<vmem>>, vector<3x96xf32>
    %c0_22 = arith.constant 0 : index
    %c0_23 = arith.constant 0 : index
    %52 = vector.load %arg3[%c0_22, %c0_23] : memref<384x96xf32, #tpu.memory_space<vmem>>, vector<384x96xf32>
    %cst_24 = arith.constant dense<0.000000e+00> : vector<8x96xf32>
    %53 = tpu.matmul %50, %52, %cst_24 {dimension_numbers = #tpu.dot_dimension_numbers<[1], [0], [0], [1], [0, 0, 1, 1], [], []>} : vector<8x384xf32>, vector<384x96xf32>, vector<8x96xf32> -> vector<8x96xf32>
    %54 = vector.extract_strided_slice %51 {offsets = [0, 0], sizes = [1, 96], strides = [1, 1]} : vector<3x96xf32> to vector<1x96xf32>
    %55 = vector.broadcast %54 : vector<1x96xf32> to vector<8x96xf32>
    %56 = arith.addf %53, %55 : vector<8x96xf32>
    %cst_25 = arith.constant 0.000000e+00 : f32
    %57 = vector.broadcast %cst_25 : f32 to vector<8x96xf32>
    %58 = arith.maximumf %56, %57 : vector<8x96xf32>
    %59 = vector.extract_strided_slice %51 {offsets = [1, 0], sizes = [1, 96], strides = [1, 1]} : vector<3x96xf32> to vector<1x96xf32>
    %60 = vector.extract_strided_slice %51 {offsets = [2, 0], sizes = [1, 96], strides = [1, 1]} : vector<3x96xf32> to vector<1x96xf32>
    %cst_26 = arith.constant dense<0.000000e+00> : vector<96xf32>
    %61 = vector.multi_reduction <add>, %58, %cst_26 [0] : vector<8x96xf32> to vector<96xf32>
    %62 = vector.shape_cast %61 : vector<96xf32> to vector<1x96xf32>
    %cst_27 = arith.constant 1.250000e-01 : f32
    %63 = vector.broadcast %cst_27 : f32 to vector<1x96xf32>
    %64 = arith.mulf %62, %63 : vector<1x96xf32>
    %65 = arith.mulf %58, %58 : vector<8x96xf32>
    %cst_28 = arith.constant dense<0.000000e+00> : vector<96xf32>
    %66 = vector.multi_reduction <add>, %65, %cst_28 [0] : vector<8x96xf32> to vector<96xf32>
    %67 = vector.shape_cast %66 : vector<96xf32> to vector<1x96xf32>
    %cst_29 = arith.constant 1.250000e-01 : f32
    %68 = vector.broadcast %cst_29 : f32 to vector<1x96xf32>
    %69 = arith.mulf %67, %68 : vector<1x96xf32>
    %70 = arith.mulf %64, %64 : vector<1x96xf32>
    %71 = arith.subf %69, %70 : vector<1x96xf32>
    %cst_30 = arith.constant 0.000000e+00 : f32
    %72 = vector.broadcast %cst_30 : f32 to vector<1x96xf32>
    %73 = arith.maximumf %71, %72 : vector<1x96xf32>
    %74 = vector.broadcast %64 : vector<1x96xf32> to vector<8x96xf32>
    %75 = arith.subf %58, %74 : vector<8x96xf32>
    %cst_31 = arith.constant 9.99999974E-6 : f32
    %76 = vector.broadcast %cst_31 : f32 to vector<1x96xf32>
    %77 = arith.addf %73, %76 : vector<1x96xf32>
    %78 = math.rsqrt %77 : vector<1x96xf32>
    %79 = vector.broadcast %78 : vector<1x96xf32> to vector<8x96xf32>
    %80 = arith.mulf %75, %79 : vector<8x96xf32>
    %81 = vector.broadcast %59 : vector<1x96xf32> to vector<8x96xf32>
    %82 = arith.mulf %80, %81 : vector<8x96xf32>
    %83 = vector.broadcast %60 : vector<1x96xf32> to vector<8x96xf32>
    %84 = arith.addf %82, %83 : vector<8x96xf32>
    %c0_32 = arith.constant 0 : index
    %c0_33 = arith.constant 0 : index
    %85 = vector.load %arg6[%c0_32, %c0_33] : memref<3x12xf32, #tpu.memory_space<vmem>>, vector<3x12xf32>
    %c0_34 = arith.constant 0 : index
    %c0_35 = arith.constant 0 : index
    %86 = vector.load %arg5[%c0_34, %c0_35] : memref<96x12xf32, #tpu.memory_space<vmem>>, vector<96x12xf32>
    %cst_36 = arith.constant dense<0.000000e+00> : vector<8x12xf32>
    %87 = tpu.matmul %84, %86, %cst_36 {dimension_numbers = #tpu.dot_dimension_numbers<[1], [0], [0], [1], [0, 0, 1, 1], [], []>} : vector<8x96xf32>, vector<96x12xf32>, vector<8x12xf32> -> vector<8x12xf32>
    %88 = vector.extract_strided_slice %85 {offsets = [0, 0], sizes = [1, 12], strides = [1, 1]} : vector<3x12xf32> to vector<1x12xf32>
    %89 = vector.broadcast %88 : vector<1x12xf32> to vector<8x12xf32>
    %90 = arith.addf %87, %89 : vector<8x12xf32>
    %cst_37 = arith.constant 0.000000e+00 : f32
    %91 = vector.broadcast %cst_37 : f32 to vector<8x12xf32>
    %92 = arith.maximumf %90, %91 : vector<8x12xf32>
    %93 = vector.extract_strided_slice %85 {offsets = [1, 0], sizes = [1, 12], strides = [1, 1]} : vector<3x12xf32> to vector<1x12xf32>
    %94 = vector.extract_strided_slice %85 {offsets = [2, 0], sizes = [1, 12], strides = [1, 1]} : vector<3x12xf32> to vector<1x12xf32>
    %cst_38 = arith.constant dense<0.000000e+00> : vector<12xf32>
    %95 = vector.multi_reduction <add>, %92, %cst_38 [0] : vector<8x12xf32> to vector<12xf32>
    %96 = vector.shape_cast %95 : vector<12xf32> to vector<1x12xf32>
    %cst_39 = arith.constant 1.250000e-01 : f32
    %97 = vector.broadcast %cst_39 : f32 to vector<1x12xf32>
    %98 = arith.mulf %96, %97 : vector<1x12xf32>
    %99 = arith.mulf %92, %92 : vector<8x12xf32>
    %cst_40 = arith.constant dense<0.000000e+00> : vector<12xf32>
    %100 = vector.multi_reduction <add>, %99, %cst_40 [0] : vector<8x12xf32> to vector<12xf32>
    %101 = vector.shape_cast %100 : vector<12xf32> to vector<1x12xf32>
    %cst_41 = arith.constant 1.250000e-01 : f32
    %102 = vector.broadcast %cst_41 : f32 to vector<1x12xf32>
    %103 = arith.mulf %101, %102 : vector<1x12xf32>
    %104 = arith.mulf %98, %98 : vector<1x12xf32>
    %105 = arith.subf %103, %104 : vector<1x12xf32>
    %cst_42 = arith.constant 0.000000e+00 : f32
    %106 = vector.broadcast %cst_42 : f32 to vector<1x12xf32>
    %107 = arith.maximumf %105, %106 : vector<1x12xf32>
    %108 = vector.broadcast %98 : vector<1x12xf32> to vector<8x12xf32>
    %109 = arith.subf %92, %108 : vector<8x12xf32>
    %cst_43 = arith.constant 9.99999974E-6 : f32
    %110 = vector.broadcast %cst_43 : f32 to vector<1x12xf32>
    %111 = arith.addf %107, %110 : vector<1x12xf32>
    %112 = math.rsqrt %111 : vector<1x12xf32>
    %113 = vector.broadcast %112 : vector<1x12xf32> to vector<8x12xf32>
    %114 = arith.mulf %109, %113 : vector<8x12xf32>
    %115 = vector.broadcast %93 : vector<1x12xf32> to vector<8x12xf32>
    %116 = arith.mulf %114, %115 : vector<8x12xf32>
    %117 = vector.broadcast %94 : vector<1x12xf32> to vector<8x12xf32>
    %118 = arith.addf %116, %117 : vector<8x12xf32>
    %c0_44 = arith.constant 0 : index
    %c0_45 = arith.constant 0 : index
    %119 = vector.load %arg7[%c0_44, %c0_45] : memref<1x17xf32, #tpu.memory_space<vmem>>, vector<1x17xf32>
    %120 = vector.extract_strided_slice %119 {offsets = [0, 0], sizes = [1, 12], strides = [1, 1]} : vector<1x17xf32> to vector<1x12xf32>
    %121 = vector.broadcast %120 : vector<1x12xf32> to vector<8x12xf32>
    %122 = arith.mulf %118, %121 : vector<8x12xf32>
    %cst_46 = arith.constant dense<0.000000e+00> : vector<8xf32>
    %123 = vector.multi_reduction <add>, %122, %cst_46 [1] : vector<8x12xf32> to vector<8xf32>
    %124 = vector.shape_cast %123 : vector<8xf32> to vector<8x1xf32>
    %125 = vector.extract_strided_slice %119 {offsets = [0, 12], sizes = [1, 1], strides = [1, 1]} : vector<1x17xf32> to vector<1x1xf32>
    %126 = vector.broadcast %125 : vector<1x1xf32> to vector<8x1xf32>
    %127 = arith.addf %124, %126 : vector<8x1xf32>
    %cst_47 = arith.constant 0.000000e+00 : f32
    %128 = vector.broadcast %cst_47 : f32 to vector<8x1xf32>
    %129 = arith.maximumf %127, %128 : vector<8x1xf32>
    %130 = vector.extract_strided_slice %119 {offsets = [0, 13], sizes = [1, 1], strides = [1, 1]} : vector<1x17xf32> to vector<1x1xf32>
    %131 = vector.extract_strided_slice %119 {offsets = [0, 14], sizes = [1, 1], strides = [1, 1]} : vector<1x17xf32> to vector<1x1xf32>
    %cst_48 = arith.constant dense<0.000000e+00> : vector<1xf32>
    %132 = vector.multi_reduction <add>, %129, %cst_48 [0] : vector<8x1xf32> to vector<1xf32>
    %133 = vector.shape_cast %132 : vector<1xf32> to vector<1x1xf32>
    %cst_49 = arith.constant 1.250000e-01 : f32
    %134 = vector.broadcast %cst_49 : f32 to vector<1x1xf32>
    %135 = arith.mulf %133, %134 : vector<1x1xf32>
    %136 = arith.mulf %129, %129 : vector<8x1xf32>
    %cst_50 = arith.constant dense<0.000000e+00> : vector<1xf32>
    %137 = vector.multi_reduction <add>, %136, %cst_50 [0] : vector<8x1xf32> to vector<1xf32>
    %138 = vector.shape_cast %137 : vector<1xf32> to vector<1x1xf32>
    %cst_51 = arith.constant 1.250000e-01 : f32
    %139 = vector.broadcast %cst_51 : f32 to vector<1x1xf32>
    %140 = arith.mulf %138, %139 : vector<1x1xf32>
    %141 = arith.mulf %135, %135 : vector<1x1xf32>
    %142 = arith.subf %140, %141 : vector<1x1xf32>
    %cst_52 = arith.constant 0.000000e+00 : f32
    %143 = vector.broadcast %cst_52 : f32 to vector<1x1xf32>
    %144 = arith.maximumf %142, %143 : vector<1x1xf32>
    %145 = vector.broadcast %135 : vector<1x1xf32> to vector<8x1xf32>
    %146 = arith.subf %129, %145 : vector<8x1xf32>
    %cst_53 = arith.constant 9.99999974E-6 : f32
    %147 = vector.broadcast %cst_53 : f32 to vector<1x1xf32>
    %148 = arith.addf %144, %147 : vector<1x1xf32>
    %149 = math.rsqrt %148 : vector<1x1xf32>
    %150 = vector.broadcast %149 : vector<1x1xf32> to vector<8x1xf32>
    %151 = arith.mulf %146, %150 : vector<8x1xf32>
    %152 = vector.broadcast %130 : vector<1x1xf32> to vector<8x1xf32>
    %153 = arith.mulf %151, %152 : vector<8x1xf32>
    %154 = vector.broadcast %131 : vector<1x1xf32> to vector<8x1xf32>
    %155 = arith.addf %153, %154 : vector<8x1xf32>
    %156 = vector.extract_strided_slice %119 {offsets = [0, 15], sizes = [1, 1], strides = [1, 1]} : vector<1x17xf32> to vector<1x1xf32>
    %157 = vector.broadcast %156 : vector<1x1xf32> to vector<8x1xf32>
    %158 = arith.mulf %155, %157 : vector<8x1xf32>
    %159 = vector.extract_strided_slice %119 {offsets = [0, 16], sizes = [1, 1], strides = [1, 1]} : vector<1x17xf32> to vector<1x1xf32>
    %160 = vector.broadcast %159 : vector<1x1xf32> to vector<8x1xf32>
    %161 = arith.addf %158, %160 : vector<8x1xf32>
    %162 = arith.negf %161 : vector<8x1xf32>
    %163 = math.exp %162 : vector<8x1xf32>
    %cst_54 = arith.constant 1.000000e+00 : f32
    %164 = vector.broadcast %cst_54 : f32 to vector<8x1xf32>
    %165 = arith.addf %164, %163 : vector<8x1xf32>
    %166 = arith.divf %164, %165 : vector<8x1xf32>
    %c0_55 = arith.constant 0 : index
    %c0_56 = arith.constant 0 : index
    %167 = vector.load %arg8[%c0_55, %c0_56] : memref<8x1xf32, #tpu.memory_space<vmem>>, vector<8x1xf32>
    tpu.vector_store %arg8[%c0_55, %c0_56], %166 {strides = array<i32>} : memref<8x1xf32, #tpu.memory_space<vmem>>, vector<8x1xf32>,
    return
  }
}

</mosaic_0001>

<bundles_post_ra>
// kernel: alert_forward.1
= control target key start
LH: loop header
LB: loop body
LE: loop exit
PB: predicated region body
PF: predicated region fallthrough
CT: control target
= control target key end

     0   :  { %vm88_vm0 = vcmask 1042432   ;;  %vm473_vm1 = vcmask 1041409   ;;  %vm475_vm2 = vcmask 1042434   ;;  %vm477_vm3 = vcmask 1043459   ;;  %s1116_s10 = smov 126   ;;  %s1117_s11 = smov 124   ;;  %s1748_s0 = inlined_call_operand.vmem [shape: f32[8,3,256], index: 0, kind: input, shape index: {}]   ;;  %s1749_s1 = inlined_call_operand.vmem [shape: f32[9,384], index: 1, kind: input, shape index: {}]   ;;  %s1750_s2 = inlined_call_operand.vmem [shape: f32[3,384], index: 2, kind: input, shape index: {}]   ;;  %s1751_s3 = inlined_call_operand.vmem [shape: f32[384,96], index: 3, kind: input, shape index: {}]   ;;  %s1752_s5 = inlined_call_operand.vmem [shape: f32[96,12], index: 5, kind: input, shape index: {}]   ;;  %s1753_s4 = inlined_call_operand.vmem [shape: f32[3,96], index: 4, kind: input, shape index: {}]   ;;  %s1754_s7 = inlined_call_operand.vmem [shape: f32[1,17], index: 7, kind: input, shape index: {}]   ;;  %s1755_s6 = inlined_call_operand.vmem [shape: f32[3,12], index: 6, kind: input, shape index: {}]   ;;  %s1756_s8 = inlined_call_operand.vmem [shape: f32[8,1], index: 8, kind: output, shape index: {}]  }
   0x1   :  { %v1168_v0 = vld [vmem:[%s1748_s0 + $0x10] sm:$0x77]  ;;  %v1173_v1 = vld [vmem:[%s1748_s0] sm:$0x77]  ;;  %v1179_v2 = vld [vmem:[%s1748_s0 + $0x18] sm:$0x77] }
   0x2   :  { %53 = vst [vmem:[#allocation1 + $0x20] ss:$2 sm:$0xff] %v1168_v0  ;;  %v1185_v3 = vld [vmem:[%s1748_s0 + $0x8] sm:$0x77]  ;;  %v1192_v4 = vld [vmem:[%s1748_s0 + $0x30] sm:$0x77]  ;;  %v131_v20 = vmul.f32 %v1168_v0, %v1168_v0  ;;  %v129_v25 = vmul.f32 %v1173_v1, %v1173_v1  ;;  %v132_v31 = vmul.f32 %v1179_v2, %v1179_v2 }
   0x3   :  { %45 = vst [vmem:[#allocation1] ss:$2 sm:$0xff] %v1173_v1  ;;  %v1197_v5 = vld [vmem:[%s1748_s0 + $0x20] sm:$0x77]  ;;  %v1205_v10 = vld [vmem:[%s1748_s0 + $0x38] sm:$0x77]  ;;  %v130_v35 = vmul.f32 %v1185_v3, %v1185_v3  ;;  %v135_v41 = vmul.f32 %v1192_v4, %v1192_v4 }
   0x4   :  { %57 = vst [vmem:[#allocation1 + $0x30] ss:$2 sm:$0xff] %v1179_v2  ;;  %v1213_v16 = vld [vmem:[%s1748_s0 + $0x28] sm:$0x77]  ;;  %v133_v46 = vmul.f32 %v1197_v5, %v1197_v5  ;;  %v136_v52 = vmul.f32 %v1205_v10, %v1205_v10  ;;  %vm565_vm4 = vcmask 1040384   ;;  %vm479_vm5 = vcmask 1044484  }
   0x5   :  { %49 = vst [vmem:[#allocation1 + $0x10] ss:$2 sm:$0xff] %v1185_v3  ;;  %v134_v56 = vmul.f32 %v1213_v16, %v1213_v16  ;;  %s1119_s12 = smov 116  }
   0x9   :  { %v54_v6 = vld.sshfl [vmem:[#allocation1 + $0x20] sm:$0xff pattern:$0x75316420]  ;;  %v55_v7 = vld.sshfl [vmem:[#allocation1 + $0x28] sm:$0xff pattern:$0x75316420] }
   0xa   :  { %v99_v8 = vsel %vm88_vm0, %v54_v6, 0.0  ;;  %v100_v9 = vsel %vm88_vm0, %v55_v7, 0.0  ;;  %66 = vst [vmem:[#allocation1 + $0x20] ss:$2 sm:$0xff] %v1192_v4 }
   0xb   :  { %v101_v11 = vadd.f32 %v100_v9, %v99_v8  ;;  %v46_v12 = vld.sshfl [vmem:[#allocation1] sm:$0xff pattern:$0x75316420]  ;;  %v47_v13 = vld.sshfl [vmem:[#allocation1 + $0x8] sm:$0xff pattern:$0x75316420] }
   0xc   :  { %v89_v14 = vsel %vm88_vm0, %v46_v12, 0.0  ;;  %v90_v15 = vsel %vm88_vm0, %v47_v13, 0.0  ;;  %60 = vst [vmem:[#allocation1] ss:$2 sm:$0xff] %v1197_v5 }
   0xd   :  { %102 = vadd.xlane.f32.xlu1 %v101_v11  ;;  %v91_v17 = vadd.f32 %v90_v15, %v89_v14  ;;  %v58_v18 = vld.sshfl [vmem:[#allocation1 + $0x30] sm:$0xff pattern:$0x75316420]  ;;  %v59_v19 = vld.sshfl [vmem:[#allocation1 + $0x38] sm:$0xff pattern:$0x75316420] }
   0xe   :  { %69 = vst [vmem:[#allocation1 + $0x30] ss:$2 sm:$0xff] %v1205_v10  ;;  %v104_v21 = vsel %vm88_vm0, %v58_v18, 0.0  ;;  %v105_v22 = vsel %vm88_vm0, %v59_v19, 0.0 }
   0xf   :  { %92 = vadd.xlane.f32.xlu0 %v91_v17  ;;  %v50_v23 = vld.sshfl [vmem:[#allocation1 + $0x10] sm:$0xff pattern:$0x75316420]  ;;  %v51_v24 = vld.sshfl [vmem:[#allocation1 + $0x18] sm:$0xff pattern:$0x75316420]  ;;  %v106_v30 = vadd.f32 %v105_v22, %v104_v21 }
  0x10   :  { %63 = vst [vmem:[#allocation1 + $0x10] ss:$2 sm:$0xff] %v1213_v16  ;;  %v94_v26 = vsel %vm88_vm0, %v50_v23, 0.0  ;;  %v95_v27 = vsel %vm88_vm0, %v51_v24, 0.0 }
  0x11   :  { %v67_v28 = vld.sshfl [vmem:[#allocation1 + $0x20] sm:$0xff pattern:$0x75316420]  ;;  %v68_v29 = vld.sshfl [vmem:[#allocation1 + $0x28] sm:$0xff pattern:$0x75316420]  ;;  %v96_v32 = vadd.f32 %v95_v27, %v94_v26 }
  0x12   :  { %153 = vst [vmem:[#allocation1 + $0x20] ss:$2 sm:$0xff] %v131_v20  ;;  %v119_v62 = vsel %vm88_vm0, %v67_v28, 0.0  ;;  %v120_v63 = vsel %vm88_vm0, %v68_v29, 0.0 }
  0x13   :  { %v61_v33 = vld.sshfl [vmem:[#allocation1] sm:$0xff pattern:$0x75316420]  ;;  %v62_v34 = vld.sshfl [vmem:[#allocation1 + $0x8] sm:$0xff pattern:$0x75316420]  ;;  %v121_v18 = vadd.f32 %v120_v63, %v119_v62 }
  0x14   :  { %v109_v36 = vsel %vm88_vm0, %v61_v33, 0.0  ;;  %v110_v37 = vsel %vm88_vm0, %v62_v34, 0.0  ;;  %145 = vst [vmem:[#allocation1] ss:$2 sm:$0xff] %v129_v25 }
  0x15   :  { %107 = vadd.xlane.f32.xlu1 %v106_v30  ;;  %v111_v38 = vadd.f32 %v110_v37, %v109_v36  ;;  %v70_v39 = vld.sshfl [vmem:[#allocation1 + $0x30] sm:$0xff pattern:$0x75316420]  ;;  %v71_v40 = vld.sshfl [vmem:[#allocation1 + $0x38] sm:$0xff pattern:$0x75316420] }
  0x16   :  { %v124_v42 = vsel %vm88_vm0, %v70_v39, 0.0  ;;  %v125_v43 = vsel %vm88_vm0, %v71_v40, 0.0  ;;  %157 = vst [vmem:[#allocation1 + $0x30] ss:$2 sm:$0xff] %v132_v31 }
  0x17   :  { %97 = vadd.xlane.f32.xlu0 %v96_v32  ;;  %112 = vadd.xlane.f32.xlu2 %v111_v38  ;;  %v64_v44 = vld.sshfl [vmem:[#allocation1 + $0x10] sm:$0xff pattern:$0x75316420]  ;;  %v65_v45 = vld.sshfl [vmem:[#allocation1 + $0x18] sm:$0xff pattern:$0x75316420]  ;;  %v126_v49 = vadd.f32 %v125_v43, %v124_v42 }
  0x18   :  { %v114_v47 = vsel %vm88_vm0, %v64_v44, 0.0  ;;  %v115_v48 = vsel %vm88_vm0, %v65_v45, 0.0  ;;  %149 = vst [vmem:[#allocation1 + $0x10] ss:$2 sm:$0xff] %v130_v35 }
  0x19   :  { %v154_v50 = vld.sshfl [vmem:[#allocation1 + $0x20] sm:$0xff pattern:$0x75316420]  ;;  %v155_v51 = vld.sshfl [vmem:[#allocation1 + $0x28] sm:$0xff pattern:$0x75316420]  ;;  %v116_v55 = vadd.f32 %v115_v48, %v114_v47 }
  0x1a   :  { %166 = vst [vmem:[#allocation1 + $0x20] ss:$2 sm:$0xff] %v135_v41  ;;  %v198_v11 = vsel %vm88_vm0, %v154_v50, 0.0  ;;  %v199_v12 = vsel %vm88_vm0, %v155_v51, 0.0 }
  0x1b   :  { %v146_v53 = vld.sshfl [vmem:[#allocation1] sm:$0xff pattern:$0x75316420]  ;;  %v147_v54 = vld.sshfl [vmem:[#allocation1 + $0x8] sm:$0xff pattern:$0x75316420]  ;;  %v200_v17 = vadd.f32 %v199_v12, %v198_v11 }
  0x1c   :  { %v188_v57 = vsel %vm88_vm0, %v146_v53, 0.0  ;;  %v189_v58 = vsel %vm88_vm0, %v147_v54, 0.0  ;;  %160 = vst [vmem:[#allocation1] ss:$2 sm:$0xff] %v133_v46 }
  0x1d   :  { %127 = vadd.xlane.f32.xlu1 %v126_v49  ;;  %v190_v59 = vadd.f32 %v189_v58, %v188_v57  ;;  %v158_v60 = vld.sshfl [vmem:[#allocation1 + $0x30] sm:$0xff pattern:$0x75316420]  ;;  %v159_v61 = vld.sshfl [vmem:[#allocation1 + $0x38] sm:$0xff pattern:$0x75316420] }
  0x1e   :  { %169 = vst [vmem:[#allocation1 + $0x30] ss:$2 sm:$0xff] %v136_v52  ;;  %v203_v23 = vsel %vm88_vm0, %v158_v60, 0.0  ;;  %v204_v24 = vsel %vm88_vm0, %v159_v61, 0.0 }
  0x1f   :  { %191 = vadd.xlane.f32.xlu0 %v190_v59  ;;  %117 = vadd.xlane.f32.xlu2 %v116_v55  ;;  %v150_v6 = vld.sshfl [vmem:[#allocation1 + $0x10] sm:$0xff pattern:$0x75316420]  ;;  %v151_v7 = vld.sshfl [vmem:[#allocation1 + $0x18] sm:$0xff pattern:$0x75316420]  ;;  %v205_v32 = vadd.f32 %v204_v24, %v203_v23 }
  0x20   :  { %v193_v8 = vsel %vm88_vm0, %v150_v6, 0.0  ;;  %v194_v9 = vsel %vm88_vm0, %v151_v7, 0.0  ;;  %163 = vst [vmem:[#allocation1 + $0x10] ss:$2 sm:$0xff] %v134_v56 }
  0x21   :  { %v195_v13 = vadd.f32 %v194_v9, %v193_v8  ;;  %v167_v14 = vld.sshfl [vmem:[#allocation1 + $0x20] sm:$0xff pattern:$0x75316420]  ;;  %v168_v15 = vld.sshfl [vmem:[#allocation1 + $0x28] sm:$0xff pattern:$0x75316420] }
  0x22   :  { %236 = vst [vmem:[#allocation1 + $0x20] ss:$2 sm:$0xff] %v1168_v0  ;;  %v218_v41 = vsel %vm88_vm0, %v167_v14, 0.0 }
  0x23   :  { %v161_v19 = vld.sshfl [vmem:[#allocation1] sm:$0xff pattern:$0x75316420]  ;;  %v162_v20 = vld.sshfl [vmem:[#allocation1 + $0x8] sm:$0xff pattern:$0x75316420] }
  0x24   :  { %228 = vst [vmem:[#allocation1] ss:$2 sm:$0xff] %v1173_v1  ;;  %v208_v1 = vsel %vm88_vm0, %v161_v19, 0.0  ;;  %v209_v28 = vsel %vm88_vm0, %v162_v20, 0.0 }
  0x25   :  { %196 = vadd.xlane.f32.xlu1 %v195_v13  ;;  %v170_v21 = vld.sshfl [vmem:[#allocation1 + $0x30] sm:$0xff pattern:$0x75316420]  ;;  %v171_v22 = vld.sshfl [vmem:[#allocation1 + $0x38] sm:$0xff pattern:$0x75316420] }
  0x26   :  { %240 = vst [vmem:[#allocation1 + $0x30] ss:$2 sm:$0xff] %v1179_v2  ;;  %v210_v2 = vadd.f32 %v209_v28, %v208_v1  ;;  %v224_v40 = vsel %vm88_vm0, %v171_v22, 0.0 }
  0x27   :  { %201 = vadd.xlane.f32.xlu0 %v200_v17  ;;  %122 = vadd.xlane.f32.xlu2 %v121_v18  ;;  %v164_v25 = vld.sshfl [vmem:[#allocation1 + $0x10] sm:$0xff pattern:$0x75316420]  ;;  %v165_v26 = vld.sshfl [vmem:[#allocation1 + $0x18] sm:$0xff pattern:$0x75316420] }
  0x28   :  { %v213_v0 = vsel %vm88_vm0, %v164_v25, 0.0  ;;  %v214_v27 = vsel %vm88_vm0, %v165_v26, 0.0  ;;  %232 = vst [vmem:[#allocation1 + $0x10] ss:$2 sm:$0xff] %v1185_v3 }
  0x29   :  { %v215_v29 = vadd.f32 %v214_v27, %v213_v0  ;;  %v237_v30 = vld.sshfl [vmem:[#allocation1 + $0x20] sm:$0xff pattern:$0x75316420]  ;;  %v238_v31 = vld.sshfl [vmem:[#allocation1 + $0x28] sm:$0xff pattern:$0x75316420] }
  0x2a   :  { %249 = vst [vmem:[#allocation1 + $0x20] ss:$2 sm:$0xff] %v1192_v4  ;;  %v223_v4 = vsel %vm88_vm0, %v170_v21, 0.0  ;;  %v281_v48 = vsel %vm88_vm0, %v237_v30, -inf  ;;  %v282_v49 = vsel %vm88_vm0, %v238_v31, -inf  ;;  %v463_v30 = vlaneseq }
  0x2b   :  { %v229_v33 = vld.sshfl [vmem:[#allocation1] sm:$0xff pattern:$0x75316420]  ;;  %v230_v34 = vld.sshfl [vmem:[#allocation1 + $0x8] sm:$0xff pattern:$0x75316420]  ;;  %v225_v43 = vadd.f32 %v224_v40, %v223_v4  ;;  %v283_v51 = vmax.f32 %v281_v48, %v282_v49 }
  0x2c   :  { %243 = vst [vmem:[#allocation1] ss:$2 sm:$0xff] %v1197_v5  ;;  %v271_v3 = vsel %vm88_vm0, %v229_v33, -inf  ;;  %v272_v37 = vsel %vm88_vm0, %v230_v34, -inf  ;;  %v219_v5 = vsel %vm88_vm0, %v168_v15, 0.0 }
  0x2d   :  { %216 = vadd.xlane.f32.xlu1 %v215_v29  ;;  %v241_v35 = vld.sshfl [vmem:[#allocation1 + $0x30] sm:$0xff pattern:$0x75316420]  ;;  %v242_v36 = vld.sshfl [vmem:[#allocation1 + $0x38] sm:$0xff pattern:$0x75316420]  ;;  %v273_v42 = vmax.f32 %v271_v3, %v272_v37  ;;  %v220_v44 = vadd.f32 %v219_v5, %v218_v41 }
  0x2e   :  { %252 = vst [vmem:[#allocation1 + $0x30] ss:$2 sm:$0xff] %v1205_v10  ;;  %v286_v10 = vsel %vm88_vm0, %v241_v35, -inf  ;;  %v287_v45 = vsel %vm88_vm0, %v242_v36, -inf }
  0x2f   :  { %211 = vadd.xlane.f32.xlu0 %v210_v2  ;;  %206 = vadd.xlane.f32.xlu2 %v205_v32  ;;  %v233_v38 = vld.sshfl [vmem:[#allocation1 + $0x10] sm:$0xff pattern:$0x75316420]  ;;  %v234_v39 = vld.sshfl [vmem:[#allocation1 + $0x18] sm:$0xff pattern:$0x75316420]  ;;  %v288_v50 = vmax.f32 %v286_v10, %v287_v45 }
  0x30   :  { %246 = vst [vmem:[#allocation1 + $0x10] ss:$2 sm:$0xff] %v1213_v16  ;;  %v276_v46 = vsel %vm88_vm0, %v233_v38, -inf  ;;  %v277_v47 = vsel %vm88_vm0, %v234_v39, -inf  ;;  %v1296_v38 = vand.u32 127, %v463_v30 }
  0x31   :  { %v278_v16 = vmax.f32 %v276_v46, %v277_v47  ;;  %v250_v52 = vld.sshfl [vmem:[#allocation1 + $0x20] sm:$0xff pattern:$0x75316420]  ;;  %v251_v53 = vld.sshfl [vmem:[#allocation1 + $0x28] sm:$0xff pattern:$0x75316420] }
  0x32   :  { %v301_v58 = vsel %vm88_vm0, %v250_v52, -inf  ;;  %v302_v59 = vsel %vm88_vm0, %v251_v53, -inf }
  0x33   :  { %v244_v54 = vld.sshfl [vmem:[#allocation1] sm:$0xff pattern:$0x75316420]  ;;  %v245_v55 = vld.sshfl [vmem:[#allocation1 + $0x8] sm:$0xff pattern:$0x75316420]  ;;  %v303_v6 = vmax.f32 %v301_v58, %v302_v59 }
  0x34   :  { %v291_v60 = vsel %vm88_vm0, %v244_v54, -inf  ;;  %v292_v61 = vsel %vm88_vm0, %v245_v55, -inf }
  0x35   :  { %274 = vmax.xlane.f32.xlu1 %v273_v42  ;;  %v293_v7 = vmax.f32 %v291_v60, %v292_v61  ;;  %v253_v9 = vld.sshfl [vmem:[#allocation1 + $0x30] sm:$0xff pattern:$0x75316420]  ;;  %v254_v11 = vld.sshfl [vmem:[#allocation1 + $0x38] sm:$0xff pattern:$0x75316420] }
  0x36   :  { %v306_v12 = vsel %vm88_vm0, %v253_v9, -inf  ;;  %v307_v13 = vsel %vm88_vm0, %v254_v11, -inf }
  0x37   :  { %226 = vadd.xlane.f32.xlu0 %v225_v43  ;;  %221 = vadd.xlane.f32.xlu2 %v220_v44  ;;  %v247_v56 = vld.sshfl [vmem:[#allocation1 + $0x10] sm:$0xff pattern:$0x75316420]  ;;  %v248_v57 = vld.sshfl [vmem:[#allocation1 + $0x18] sm:$0xff pattern:$0x75316420]  ;;  %v308_v14 = vmax.f32 %v306_v12, %v307_v13 }
  0x38   :  { %v296_v62 = vsel %vm88_vm0, %v247_v56, -inf  ;;  %v297_v63 = vsel %vm88_vm0, %v248_v57, -inf  ;;  %vm481_vm0 = vcmask 1045509  }
  0x39   :  { %v298_v8 = vmax.f32 %v296_v62, %v297_v63 }
  0x3d   :  { %289 = vmax.xlane.f32.xlu1 %v288_v50 }
  0x3f   :  { %279 = vmax.xlane.f32.xlu2 %v278_v16  ;;  %284 = vmax.xlane.f32.xlu0 %v283_v51 }
  0x45   :  { %304 = vmax.xlane.f32.xlu1 %v303_v6 }
  0x47   :  { %294 = vmax.xlane.f32.xlu2 %v293_v7  ;;  %299 = vmax.xlane.f32.xlu0 %v298_v8 }
  0x4f   :  { %309 = vmax.xlane.f32.xlu2 %v308_v14  ;;  %v547_v14 = vld [vmem:[%s1749_s1 + $0x18] sm:$0x1] }
  0x50   :  { %1069 = vmatpush.msk.msra.mxu0 %vm565_vm4, %v547_v14 }
  0x80   :  { %v103_v15 = vpop.xlane.xlu1 %102 }
  0x81   :  { %v321_v27 = vmul.f32 %v103_v15, %v103_v15  ;;  %v313_v42 = vmul.f32 0.00390625, %v103_v15  ;;  %v548_v15 = vld [vmem:[%s1749_s1 + $0x20] sm:$0x1] }
  0x82   :  { %v93_v17 = vpop.xlane.xlu0 %92  ;;  %1071 = vmatpush.msk.msra.mxu1 %vm565_vm4, %v548_v15 }
  0x83   :  { %v319_v21 = vmul.f32 %v93_v17, %v93_v17  ;;  %v329_v2 = vmul.f32 0.00390625, %v321_v27  ;;  %v311_v39 = vmul.f32 0.00390625, %v93_v17  ;;  %v467_v52 = vperm.slane %v313_v42, %v1296_v38  ;;  %v544_v17 = vld [vmem:[%s1749_s1] sm:$0xff] }
  0x84   :  { %v1349_v27 = vadd.s32 4294967290, %v1296_v38  ;;  %590 = vmatpush.msra.mxu0 %v544_v17 }
  0x85   :  { %v327_v23 = vmul.f32 0.00390625, %v319_v21  ;;  %v465_v46 = vperm.slane %v311_v39, %v1296_v38  ;;  %v549_v21 = vld [vmem:[%s1749_s1 + $0x28] sm:$0x1] }
  0x86   :  { %1073 = vmatpush.msk.msra.mxu2 %vm565_vm4, %v549_v21  ;;  %vm483_vm4 = vcmask 1046534  }
  0x88   :  { %v108_v18 = vpop.xlane.xlu1 %107 }
  0x89   :  { %v322_v4 = vmul.f32 %v108_v18, %v108_v18  ;;  %v314_v47 = vmul.f32 0.00390625, %v108_v18 }
  0x8a   :  { %v98_v19 = vpop.xlane.xlu0 %97  ;;  %v113_v20 = vpop.xlane.xlu2 %112 }
  0x8b   :  { %v320_v26 = vmul.f32 %v98_v19, %v98_v19  ;;  %v312_v35 = vmul.f32 0.00390625, %v98_v19  ;;  %v323_v40 = vmul.f32 %v113_v20, %v113_v20  ;;  %v330_v50 = vmul.f32 0.00390625, %v322_v4 }
  0x8c   :  { %v468_v60 = vperm.slane %v314_v47, %v1296_v38  ;;  %v315_v61 = vmul.f32 0.00390625, %v113_v20 }
  0x8d   :  { %v328_v28 = vmul.f32 0.00390625, %v320_v26  ;;  %v466_v44 = vperm.slane %v312_v35, %v1296_v38  ;;  %v331_v16 = vmul.f32 0.00390625, %v323_v40  ;;  %v1363_v40 = vadd.s32 4294967293, %v1296_v38 }
  0x8f   :  { %v474_v59 = vsel %vm473_vm1, %v466_v44, %v465_v46 }
  0x90   :  { %v1285_v22 = vpop.xlane.xlu1 %127  ;;  %v476_v13 = vsel %vm475_vm2, %v467_v52, %v474_v59 }
  0x91   :  { %v326_v62 = vmul.f32 %v1285_v22, %v1285_v22  ;;  %v478_v30 = vsel %vm477_vm3, %v468_v60, %v476_v13  ;;  %v1360_v4 = vmul.f32 0.00390625, %v1285_v22 }
  0x92   :  { %v192_v24 = vpop.xlane.xlu0 %191  ;;  %v1287_v25 = vpop.xlane.xlu2 %117 }
  0x93   :  { %v335_v0 = vsub.f32 %v192_v24, %v327_v23  ;;  %v324_v36 = vmul.f32 %v1287_v25, %v1287_v25  ;;  %v545_v23 = vld [vmem:[%s1749_s1 + $0x8] sm:$0xff]  ;;  %v546_v24 = vld [vmem:[%s1749_s1 + $0x10] sm:$0xff]  ;;  %s1115_s1 = smov 127  }
  0x94   :  { %610 = vmatpush.msra.mxu1 %v545_v23  ;;  %630 = vmatpush.msra.mxu2 %v546_v24 }
  0x95   :  { %v343_v1 = vmul.f32 0.003921569, %v335_v0  ;;  %v332_v10 = vmul.f32 0.00390625, %v324_v36  ;;  %v469_v36 = vperm.slane %v315_v61, %v1296_v38 }
  0x97   :  { %v1289_v29 = vmax.f32 %v343_v1, 0.0  ;;  %v334_v1 = vmul.f32 0.00390625, %v326_v62 }
  0x98   :  { %v197_v31 = vpop.xlane.xlu1 %196 }
  0x99   :  { %1083 = vrsqrt.f32 %v1289_v29  ;;  %v336_v32 = vsub.f32 %v197_v31, %v328_v28  ;;  %vm366_vm6 = vcmp.eq.f32.partialorder %v1289_v29, inf  ;;  %vm368_vm7 = vcmp.eq.f32.partialorder %v1289_v29, 0.0 }
  0x9a   :  { %v202_v33 = vpop.xlane.xlu0 %201  ;;  %v1292_v34 = vpop.xlane.xlu2 %122 }
  0x9b   :  { %v344_v3 = vmul.f32 0.003921569, %v336_v32  ;;  %v337_v37 = vsub.f32 %v202_v33, %v329_v2  ;;  %v325_v63 = vmul.f32 %v1292_v34, %v1292_v34  ;;  %v1370_v46 = vmul.f32 0.00390625, %v1292_v34 }
  0x9d   :  { %v1298_v41 = vmax.f32 %v344_v3, 0.0  ;;  %v345_v5 = vmul.f32 0.003921569, %v337_v37  ;;  %v333_v28 = vmul.f32 0.00390625, %v325_v63  ;;  %v1357_v3 = vmul.f32 0.00390625, %v1287_v25 }
  0x9f   :  { %v1300_v43 = vpop.eup %1083  ;;  %1085 = vrsqrt.f32 %v1298_v41  ;;  %v1304_v45 = vmax.f32 %v345_v5, 0.0  ;;  %v470_v52 = vperm.slane %v1357_v3, %v1296_v38  ;;  %vm378_vm8 = vcmp.eq.f32.partialorder %v1298_v41, inf }
  0xa0   :  { %v360_v48 = vmul.f32 %v1300_v43, %v1289_v29  ;;  %v217_v49 = vpop.xlane.xlu1 %216  ;;  %vm380_vm9 = vcmp.eq.f32.partialorder %v1298_v41, 0.0 }
  0xa1   :  { %1087 = vrsqrt.f32 %v1304_v45  ;;  %v340_v51 = vsub.f32 %v217_v49, %v332_v10  ;;  %vm390_vm10 = vcmp.eq.f32.partialorder %v1304_v45, inf  ;;  %vm392_vm11 = vcmp.eq.f32.partialorder %v1304_v45, 0.0 }
  0xa2   :  { %v212_v53 = vpop.xlane.xlu0 %211  ;;  %v207_v54 = vpop.xlane.xlu2 %206  ;;  %v361_v55 = vmul.f32 %v1300_v43, %v360_v48  ;;  %v1373_v48 = vsel %vm479_vm5, %v469_v36, %v478_v30  ;;  %v393_v17 = vand.u32 2147483648, %v1304_v45 }
  0xa3   :  { %v348_v56 = vmul.f32 0.003921569, %v340_v51  ;;  %v339_v57 = vsub.f32 %v212_v53, %v331_v16  ;;  %v338_v58 = vsub.f32 %v207_v54, %v330_v50 }
  0xa4   :  { %v362_v12 = vmul.f32 0.5, %v361_v55 }
  0xa5   :  { %v1086_v6 = vpop.eup %1085  ;;  %v1318_v7 = vmax.f32 %v348_v56, 0.0  ;;  %v347_v8 = vmul.f32 0.003921569, %v339_v57  ;;  %v346_v9 = vmul.f32 0.003921569, %v338_v58  ;;  %v369_v56 = vand.u32 2147483648, %v1289_v29 }
  0xa6   :  { %v372_v11 = vmul.f32 %v1086_v6, %v1298_v41  ;;  %v363_v32 = vsub.f32 1.5, %v362_v12  ;;  %v471_v58 = vperm.slane %v1370_v46, %v1296_v38 }
  0xa7   :  { %v1088_v18 = vpop.eup %1087  ;;  %1089 = vrsqrt.f32 %v1318_v7  ;;  %v1332_v19 = vmax.f32 %v347_v8, 0.0  ;;  %v1334_v20 = vmax.f32 %v346_v9, 0.0  ;;  %vm426_vm14 = vcmp.eq.f32.partialorder %v1318_v7, inf }
  0xa8   :  { %v384_v26 = vmul.f32 %v1088_v18, %v1304_v45  ;;  %v373_v0 = vmul.f32 %v1086_v6, %v372_v11  ;;  %v1365_v5 = vpop.xlane.xlu1 %274  ;;  %v364_v49 = vmul.f32 %v1300_v43, %v363_v32 }
  0xa9   :  { %1091 = vrsqrt.f32 %v1332_v19  ;;  %v497_v14 = vperm.slane %v1365_v5, %v1363_v40  ;;  %vm402_vm12 = vcmp.eq.f32.partialorder %v1334_v20, inf  ;;  %vm404_vm13 = vcmp.eq.f32.partialorder %v1334_v20, 0.0 }
  0xaa   :  { %1093 = vrsqrt.f32 %v1334_v20  ;;  %v227_v31 = vpop.xlane.xlu0 %226  ;;  %v222_v2 = vpop.xlane.xlu2 %221  ;;  %v374_v33 = vmul.f32 0.5, %v373_v0  ;;  %v385_v35 = vmul.f32 %v1088_v18, %v384_v26  ;;  %v365_v61 = vmul.f32 %v364_v49, %v1289_v29 }
  0xab   :  { %v342_v37 = vsub.f32 %v227_v31, %v334_v1  ;;  %v341_v39 = vsub.f32 %v222_v2, %v333_v28  ;;  %v405_v28 = vand.u32 2147483648, %v1334_v20  ;;  %vm414_vm15 = vcmp.eq.f32.partialorder %v1332_v19, inf }
  0xac   :  { %v375_v42 = vsub.f32 1.5, %v374_v33  ;;  %v386_v44 = vmul.f32 0.5, %v385_v35  ;;  %v367_v21 = vsel %vm366_vm6, %v1289_v29, %v365_v61  ;;  %vm416_vm6 = vcmp.eq.f32.partialorder %v1332_v19, 0.0 }
  0xad   :  { %v1367_v10 = vpop.eup %1089  ;;  %v350_v47 = vmul.f32 0.003921569, %v342_v37  ;;  %v349_v25 = vmul.f32 0.003921569, %v341_v39  ;;  %v370_v36 = vsel %vm368_vm7, %v369_v56, %v367_v21  ;;  %vm485_vm7 = vcmask 1047559  }
  0xae   :  { %v420_v22 = vmul.f32 %v1367_v10, %v1318_v7  ;;  %v376_v50 = vmul.f32 %v1086_v6, %v375_v42  ;;  %v387_v16 = vsub.f32 1.5, %v386_v44  ;;  %v381_v6 = vand.u32 2147483648, %v1298_v41 }
  0xaf   :  { %v1092_v51 = vpop.eup %1091  ;;  %v1380_v53 = vmax.f32 %v350_v47, 0.0  ;;  %v1382_v34 = vmax.f32 %v349_v25, 0.0  ;;  %v429_v21 = vand.u32 2147483648, %v1318_v7 }
  0xb0   :  { %v1094_v54 = vpop.eup %1093  ;;  %v408_v55 = vmul.f32 %v1092_v51, %v1332_v19  ;;  %v388_v43 = vmul.f32 %v1088_v18, %v387_v16  ;;  %v421_v57 = vmul.f32 %v1367_v10, %v420_v22  ;;  %v377_v60 = vmul.f32 %v376_v50, %v1298_v41  ;;  %v290_v24 = vpop.xlane.xlu1 %289 }
  0xb1   :  { %v396_v59 = vmul.f32 %v1094_v54, %v1334_v20  ;;  %1095 = vrsqrt.f32 %v1380_v53  ;;  %v522_v50 = vperm.slane %v370_v36, %v1349_v27  ;;  %v500_v16 = vperm.slane %v290_v24, %v1363_v40 }
  0xb2   :  { %1097 = vrsqrt.f32 %v1382_v34  ;;  %v280_v62 = vpop.xlane.xlu2 %279  ;;  %v409_v63 = vmul.f32 %v1092_v51, %v408_v55  ;;  %v285_v8 = vpop.xlane.xlu0 %284  ;;  %v389_v11 = vmul.f32 %v388_v43, %v1304_v45  ;;  %v422_v13 = vmul.f32 0.5, %v421_v57 }
  0xb3   :  { %v397_v9 = vmul.f32 %v1094_v54, %v396_v59  ;;  %v379_v15 = vsel %vm378_vm8, %v1298_v41, %v377_v60  ;;  %v498_v23 = vperm.slane %v280_v62, %v1363_v40  ;;  %v499_v37 = vperm.slane %v285_v8, %v1363_v40 }
  0xb4   :  { %v410_v12 = vmul.f32 0.5, %v409_v63  ;;  %v423_v30 = vsub.f32 1.5, %v422_v13  ;;  %v382_v2 = vsel %vm380_vm9, %v381_v6, %v379_v15  ;;  %v391_v32 = vsel %vm390_vm10, %v1304_v45, %v389_v11 }
  0xb5   :  { %v398_v18 = vmul.f32 0.5, %v397_v9  ;;  %v505_v41 = vsel %vm473_vm1, %v498_v23, %v497_v14  ;;  %v523_v22 = vperm.slane %v382_v2, %v1349_v27  ;;  %v394_v29 = vsel %vm392_vm11, %v393_v17, %v391_v32 }
  0xb6   :  { %v411_v26 = vsub.f32 1.5, %v410_v12  ;;  %v424_v47 = vmul.f32 %v1367_v10, %v423_v30  ;;  %v506_v10 = vsel %vm475_vm2, %v499_v37, %v505_v41  ;;  %v524_v57 = vperm.slane %v394_v29, %v1349_v27  ;;  %v787_v29 = vld [vmem:[%s1751_s3 + $0xf8] sm:$0xff] }
  0xb7   :  { %v1096_v0 = vpop.eup %1095  ;;  %v399_v1 = vsub.f32 1.5, %v398_v18  ;;  %v417_v60 = vand.u32 2147483648, %v1332_v19  ;;  %v530_v62 = vsel %vm473_vm1, %v523_v22, %v522_v50  ;;  %v507_v8 = vsel %vm477_vm3, %v500_v16, %v506_v10  ;;  %v771_v22 = vld [vmem:[%s1751_s3 + $0x78] sm:$0xff]  ;;  %825 = vmatpush.msrb.mxu0 %v787_v29  ;;  %v786_v50 = vld [vmem:[%s1751_s3 + $0xf0] sm:$0xff]  ;;  %v769_v10 = vld [vmem:[%s1751_s3 + $0x68] sm:$0xff] }
  0xb8   :  { %v1098_v31 = vpop.eup %1097  ;;  %v412_v33 = vmul.f32 %v1092_v51, %v411_v26  ;;  %v444_v35 = vmul.f32 %v1096_v0, %v1380_v53  ;;  %v425_v61 = vmul.f32 %v424_v47, %v1318_v7  ;;  %v305_v13 = vpop.xlane.xlu1 %304  ;;  %vm428_vm8 = vcmp.eq.f32.partialorder %v1318_v7, 0.0  ;;  %805 = vmatpush.msra.mxu3 %v771_v22 }
  0xb9   :  { %v400_v39 = vmul.f32 %v1094_v54, %v399_v1  ;;  %v432_v5 = vmul.f32 %v1098_v31, %v1382_v34  ;;  %v531_v17 = vsel %vm475_vm2, %v524_v57, %v530_v62  ;;  %vm450_vm1 = vcmp.eq.f32.partialorder %v1380_v53, inf  ;;  %826 = vmatpush.msrb.mxu0 %v786_v50  ;;  %v776_v50 = vld [vmem:[%s1751_s3 + $0xa0] sm:$0xff] }
  0xba   :  { %v413_v42 = vmul.f32 %v412_v33, %v1332_v19  ;;  %v295_v44 = vpop.xlane.xlu2 %294  ;;  %v445_v25 = vmul.f32 %v1096_v0, %v444_v35  ;;  %v300_v43 = vpop.xlane.xlu0 %299  ;;  %v427_v18 = vsel %vm426_vm14, %v1318_v7, %v425_v61  ;;  %v503_v24 = vperm.slane %v305_v13, %v1363_v40 }
  0xbb   :  { %v401_v49 = vmul.f32 %v400_v39, %v1334_v20  ;;  %v433_v51 = vmul.f32 %v1098_v31, %v432_v5  ;;  %v501_v56 = vperm.slane %v295_v44, %v1363_v40  ;;  %v502_v12 = vperm.slane %v300_v43, %v1363_v40  ;;  %v803_v43 = vld [vmem:[%s1751_s3 + $0x178] sm:$0xff] }
  0xbc   :  { %v446_v54 = vmul.f32 0.5, %v445_v25  ;;  %v415_v45 = vsel %vm414_vm15, %v1332_v19, %v413_v42  ;;  %vm452_vm2 = vcmp.eq.f32.partialorder %v1380_v53, 0.0  ;;  %v453_v30 = vand.u32 2147483648, %v1380_v53  ;;  %845 = vmatpush.msrb.mxu1 %v803_v43 }
  0xbd   :  { %v403_v55 = vsel %vm402_vm12, %v1334_v20, %v401_v49  ;;  %v434_v63 = vmul.f32 0.5, %v433_v51  ;;  %v418_v11 = vsel %vm416_vm6, %v417_v60, %v415_v45  ;;  %v508_v20 = vsel %vm479_vm5, %v501_v56, %v507_v8  ;;  %v770_v49 = vld [vmem:[%s1751_s3 + $0x70] sm:$0xff]  ;;  %v768_v45 = vld [vmem:[%s1751_s3 + $0x60] sm:$0xff] }
  0xbe   :  { %v406_v59 = vsel %vm404_vm13, %v405_v28, %v403_v55  ;;  %v447_v6 = vsub.f32 1.5, %v446_v54  ;;  %v526_v23 = vperm.slane %v418_v11, %v1349_v27  ;;  %v509_v28 = vsel %vm481_vm0, %v502_v12, %v508_v20  ;;  %806 = vmatpush.msra.mxu3 %v770_v49  ;;  %v1517_v54 = vld [vmem:[%s1750_s2 + $0x8] sm:$0x7]  ;;  %v784_v56 = vld [vmem:[%s1751_s3 + $0xe0] sm:$0xff]  ;;  %v802_v8 = vld [vmem:[%s1751_s3 + $0x170] sm:$0xff] }
  0xbf   :  { %v525_v9 = vperm.slane %v406_v59, %v1349_v27  ;;  %v435_v14 = vsub.f32 1.5, %v434_v63  ;;  %v430_v32 = vsel %vm428_vm8, %v429_v21, %v427_v18  ;;  %v441_v36 = vand.u32 2147483648, %v1382_v34  ;;  %v785_v55 = vld [vmem:[%s1751_s3 + $0xe8] sm:$0xff]  ;;  %v767_v63 = vld [vmem:[%s1751_s3 + $0x58] sm:$0xff]  ;;  %v782_v11 = vld [vmem:[%s1751_s3 + $0xd0] sm:$0xff]  ;;  %846 = vmatpush.msrb.mxu1 %v802_v8 }
  0xc0   :  { %v448_v15 = vmul.f32 %v1096_v0, %v447_v6  ;;  %vm440_vm9 = vcmp.eq.f32.partialorder %v1382_v34, 0.0  ;;  %v510_v3 = vsel %vm483_vm4, %v503_v24, %v509_v28  ;;  %v472_v5 = vperm.slane %v1360_v4, %v1296_v38  ;;  %v1498_v38 = vld [vmem:[%s1750_s2] sm:$0x77]  ;;  %807 = vmatpush.msra.mxu3 %v769_v10  ;;  %827 = vmatpush.msrb.mxu0 %v785_v55  ;;  %v783_v6 = vld [vmem:[%s1751_s3 + $0xd8] sm:$0xff]  ;;  %v801_v12 = vld [vmem:[%s1751_s3 + $0x168] sm:$0xff] }
  0xc1   :  { %v436_v26 = vmul.f32 %v1098_v31, %v435_v14  ;;  %v532_v0 = vsel %vm477_vm3, %v525_v9, %v531_v17  ;;  %v482_v31 = vsel %vm481_vm0, %v470_v52, %v1373_v48  ;;  %vm438_vm3 = vcmp.eq.f32.partialorder %v1382_v34, inf  ;;  %v766_v9 = vld [vmem:[%s1751_s3 + $0x50] sm:$0xff]  ;;  %v765_v14 = vld [vmem:[%s1751_s3 + $0x48] sm:$0xff]  ;;  %847 = vmatpush.msrb.mxu1 %v801_v12  ;;  %v760_v49 = vld [vmem:[%s1751_s3 + $0x20] sm:$0xff] }
  0xc2   :  { %v310_v19 = vpop.xlane.xlu2 %309  ;;  %v449_v1 = vmul.f32 %v448_v15, %v1380_v53  ;;  %v527_v48 = vperm.slane %v430_v32, %v1349_v27  ;;  %vm540_vm10 = vcmask 48128   ;;  %vm561_vm11 = vcmask 72704   ;;  %808 = vmatpush.msra.mxu3 %v768_v45  ;;  %828 = vmatpush.msrb.mxu0 %v784_v56  ;;  %v781_v15 = vld [vmem:[%s1751_s3 + $0xc8] sm:$0xff]  ;;  %v795_v55 = vld [vmem:[%s1751_s3 + $0x138] sm:$0xff]  ;;  %v774_v12 = vld [vmem:[%s1751_s3 + $0x90] sm:$0xff] }
  0xc3   :  { %v504_v2 = vperm.slane %v310_v19, %v1363_v40  ;;  %v437_v33 = vmul.f32 %v436_v26, %v1382_v34  ;;  %v533_v40 = vsel %vm479_vm5, %v526_v23, %v532_v0  ;;  %vm538_vm5 = vcmask 23552   ;;  %v800_v19 = vld [vmem:[%s1751_s3 + $0x160] sm:$0xff]  ;;  %v799_v0 = vld [vmem:[%s1751_s3 + $0x158] sm:$0xff] }
  0xc4   :  { %v451_v35 = vsel %vm450_vm1, %v1380_v53, %v449_v1  ;;  %v484_v53 = vsel %vm483_vm4, %v471_v58, %v482_v31  ;;  %v553_v4 = vperm.slane %v1498_v38, 4  ;;  %v554_v60 = vperm.slane %v1517_v54, 0  ;;  %809 = vmatpush.msra.mxu3 %v767_v63  ;;  %829 = vmatpush.msrb.mxu0 %v783_v6  ;;  %v764_v26 = vld [vmem:[%s1751_s3 + $0x40] sm:$0xff]  ;;  %v779_v31 = vld [vmem:[%s1751_s3 + $0xb8] sm:$0xff]  ;;  %v794_v63 = vld [vmem:[%s1751_s3 + $0x130] sm:$0xff] }
  0xc5   :  { %v454_v37 = vsel %vm452_vm2, %v453_v30, %v451_v35  ;;  %v439_v7 = vsel %vm438_vm3, %v1382_v34, %v437_v33  ;;  %v511_v41 = vsel %vm485_vm7, %v504_v2, %v510_v3  ;;  %v534_v34 = vsel %vm481_vm0, %v527_v48, %v533_v40  ;;  %v780_v1 = vld [vmem:[%s1751_s3 + $0xc0] sm:$0xff]  ;;  %848 = vmatpush.msrb.mxu1 %v800_v19  ;;  %v763_v35 = vld [vmem:[%s1751_s3 + $0x38] sm:$0xff]  ;;  %v778_v48 = vld [vmem:[%s1751_s3 + $0xb0] sm:$0xff] }
  0xc6   :  { %v442_v39 = vsel %vm440_vm9, %v441_v36, %v439_v7  ;;  %v529_v52 = vperm.slane %v454_v37, %v1349_v27  ;;  %v486_v46 = vsel %vm485_vm7, %v472_v5, %v484_v53  ;;  %v559_v51 = vperm.slane %v553_v4, 0  ;;  %810 = vmatpush.msra.mxu3 %v766_v9  ;;  %830 = vmatpush.msrb.mxu0 %v782_v11  ;;  %v798_v37 = vld [vmem:[%s1751_s3 + $0x150] sm:$0xff]  ;;  %v797_v5 = vld [vmem:[%s1751_s3 + $0x148] sm:$0xff] }
  0xc7   :  { %v528_v42 = vperm.slane %v442_v39, %v1349_v27  ;;  %v539_v47 = vsel %vm538_vm5, %v486_v46, %v511_v41  ;;  %v552_v27 = vperm.slane %v1498_v38, 0  ;;  %v560_v17 = vperm.slane %v554_v60, 0  ;;  %849 = vmatpush.msrb.mxu1 %v799_v0  ;;  %v762_v39 = vld [vmem:[%s1751_s3 + $0x30] sm:$0xff]  ;;  %v793_v19 = vld [vmem:[%s1751_s3 + $0x128] sm:$0xff] }
  0xc8   :  { %811 = vmatpush.msra.mxu3 %v765_v14  ;;  %831 = vmatpush.msrb.mxu0 %v781_v15  ;;  %v758_v11 = vld [vmem:[%s1751_s3 + $0x10] sm:$0xff]  ;;  %vm866_vm1 = vcmask 785408   ;;  %vm942_vm5 = vcmask 97280  }
  0xc9   :  { %v535_v58 = vsel %vm483_vm4, %v528_v42, %v534_v34  ;;  %v558_v16 = vperm.slane %v552_v27, 0  ;;  %850 = vmatpush.msrb.mxu1 %v798_v37  ;;  %v796_v27 = vld [vmem:[%s1751_s3 + $0x140] sm:$0xff] }
  0xca   :  { %v536_v44 = vsel %vm485_vm7, %v529_v52, %v535_v58  ;;  %812 = vmatpush.msra.mxu3 %v764_v26  ;;  %832 = vmatpush.msrb.mxu0 %v780_v1  ;;  %v761_v58 = vld [vmem:[%s1751_s3 + $0x28] sm:$0xff] }
  0xcb   :  { %v541_v25 = vsel %vm540_vm10, %v539_v47, %v536_v44  ;;  %v777_v44 = vld [vmem:[%s1751_s3 + $0xa8] sm:$0xff]  ;;  %851 = vmatpush.msrb.mxu1 %v797_v5 }
  0xcc   :  { %1070 = vmatmul.msk.f32.vlgmr.msra.gmra.mxu0 %vm561_vm11, %v541_v25  ;;  %1072 = vmatmul.msk.f32.vlgmr.msra.gmra.mxu1 %vm561_vm11, %v541_v25 }
  0xcd   :  { %1074 = vmatmul.msk.f32.vlgmr.msra.gmra.mxu2 %vm561_vm11, %v541_v25  ;;  %813 = vmatpush.msra.mxu3 %v763_v35 }
  0xce   :  { %833 = vmatpush.msrb.mxu0 %v779_v31  ;;  %852 = vmatpush.msrb.mxu1 %v796_v27 }
  0xcf   :  { %814 = vmatpush.msra.mxu3 %v762_v39  ;;  %v790_v39 = vld [vmem:[%s1751_s3 + $0x110] sm:$0xff] }
  0xd0   :  { %834 = vmatpush.msrb.mxu0 %v778_v48  ;;  %853 = vmatpush.msrb.mxu1 %v795_v55  ;;  %v731_v55 = vperm.slane %v1498_v38, 1 }
  0xd1   :  { %815 = vmatpush.msra.mxu3 %v761_v58  ;;  %v788_v58 = vld [vmem:[%s1751_s3 + $0x100] sm:$0xff] }
  0xd2   :  { %835 = vmatpush.msrb.mxu0 %v777_v44  ;;  %854 = vmatpush.msrb.mxu1 %v794_v63 }
  0xd3   :  { %816 = vmatpush.msra.mxu3 %v760_v49 }
  0xd4   :  { %836 = vmatpush.msrb.mxu0 %v776_v50  ;;  %855 = vmatpush.msrb.mxu1 %v793_v19 }
 0x149   :  { %v592_v57 = vpop.f32.mrf.mxu0  ;;  %v612_v59 = vpop.f32.mrf.mxu1 }
 0x14a   :  { %v593_v61 = vadd.f32 %v592_v57, %v558_v16  ;;  %v613_v62 = vadd.f32 %v612_v59, %v559_v51  ;;  %v759_v57 = vld [vmem:[%s1751_s3 + $0x18] sm:$0xff] }
 0x14b   :  { %v775_v59 = vld [vmem:[%s1751_s3 + $0x98] sm:$0xff]  ;;  %817 = vmatpush.msra.mxu3 %v759_v57 }
 0x14c   :  { %v1553_v13 = vmax.f32 %v593_v61, 0.0  ;;  %v1555_v20 = vmax.f32 %v613_v62, 0.0  ;;  %837 = vmatpush.msrb.mxu0 %v775_v59 }
 0x14d   :  { %818 = vmatpush.msra.mxu3 %v758_v11  ;;  %v737_v11 = vperm.slane %v731_v55, 1 }
 0x14e   :  { %v638_v18 = vrot.slane %v1553_v13, 4  ;;  %v659_v21 = vmul.f32 %v1553_v13, %v1553_v13  ;;  %v644_v23 = vrot.slane %v1555_v20, 4  ;;  %v660_v24 = vmul.f32 %v1555_v20, %v1555_v20  ;;  %838 = vmatpush.msrb.mxu0 %v774_v12 }
 0x150   :  { %v639_v28 = vadd.f32 %v638_v18, %v1553_v13  ;;  %v662_v30 = vrot.slane %v659_v21, 4  ;;  %v645_v2 = vadd.f32 %v644_v23, %v1555_v20  ;;  %v668_v32 = vrot.slane %v660_v24, 4  ;;  %v632_v33 = vpop.f32.mrf.mxu2  ;;  %v757_v23 = vld [vmem:[%s1751_s3 + $0x8] sm:$0xff] }
 0x151   :  { %v633_v36 = vadd.f32 %v632_v33, %v560_v17  ;;  %v772_v33 = vld [vmem:[%s1751_s3 + $0x80] sm:$0xff]  ;;  %819 = vmatpush.msra.mxu3 %v757_v23 }
 0x152   :  { %v640_v40 = vrot.slane %v639_v28, 2  ;;  %v663_v7 = vadd.f32 %v662_v30, %v659_v21  ;;  %v646_v53 = vrot.slane %v645_v2, 2  ;;  %v669_v3 = vadd.f32 %v668_v32, %v660_v24  ;;  %v773_v24 = vld [vmem:[%s1751_s3 + $0x88] sm:$0xff]  ;;  %v756_v32 = vld [vmem:[%s1751_s3] sm:$0xff] }
 0x153   :  { %v1598_v52 = vmax.f32 %v633_v36, 0.0  ;;  %839 = vmatpush.msrb.mxu0 %v773_v24  ;;  %v791_v36 = vld [vmem:[%s1751_s3 + $0x118] sm:$0xff]  ;;  %820 = vmatpush.msra.mxu3 %v756_v32 }
 0x154   :  { %v641_v41 = vadd.f32 %v640_v40, %v639_v28  ;;  %v664_v42 = vrot.slane %v663_v7, 2  ;;  %v647_v34 = vadd.f32 %v646_v53, %v645_v2  ;;  %v670_v46 = vrot.slane %v669_v3, 2  ;;  %v792_v28 = vld [vmem:[%s1751_s3 + $0x120] sm:$0xff] }
 0x155   :  { %v650_v47 = vrot.slane %v1598_v52, 4  ;;  %v661_v25 = vmul.f32 %v1598_v52, %v1598_v52  ;;  %856 = vmatpush.msrb.mxu1 %v792_v28  ;;  %840 = vmatpush.msrb.mxu0 %v772_v33 }
 0x156   :  { %v665_v4 = vadd.f32 %v664_v42, %v663_v7  ;;  %v648_v22 = vrot.slane %v647_v34, 1  ;;  %v671_v29 = vadd.f32 %v670_v46, %v669_v3  ;;  %v642_v16 = vrot.slane %v641_v41, 1 }
 0x157   :  { %v651_v51 = vadd.f32 %v650_v47, %v1598_v52  ;;  %v674_v10 = vrot.slane %v661_v25, 4  ;;  %857 = vmatpush.msrb.mxu1 %v791_v36  ;;  %v913_v36 = vld [vmem:[%s1752_s5 + $0x40] sm:$0xff] }
 0x158   :  { %v666_v45 = vrot.slane %v665_v4, 1  ;;  %v649_v56 = vadd.f32 %v648_v22, %v647_v34  ;;  %v672_v43 = vrot.slane %v671_v29, 1  ;;  %v643_v60 = vadd.f32 %v642_v16, %v641_v41  ;;  %v789_v34 = vld [vmem:[%s1751_s3 + $0x108] sm:$0xff] }
 0x159   :  { %v652_v61 = vrot.slane %v651_v51, 2  ;;  %v675_v62 = vadd.f32 %v674_v10, %v661_v25  ;;  %858 = vmatpush.msrb.mxu1 %v790_v39  ;;  %v907_v39 = vld [vmem:[%s1752_s5 + $0x10] sm:$0xff] }
 0x15a   :  { %v667_v6 = vadd.f32 %v666_v45, %v665_v4  ;;  %v1634_v8 = vmul.f32 0.125, %v649_v56  ;;  %v673_v9 = vadd.f32 %v672_v43, %v671_v29  ;;  %v1642_v14 = vmul.f32 0.125, %v643_v60 }
 0x15b   :  { %v653_v15 = vadd.f32 %v652_v61, %v651_v51  ;;  %v676_v17 = vrot.slane %v675_v62, 2  ;;  %859 = vmatpush.msrb.mxu1 %v789_v34  ;;  %v732_v51 = vperm.slane %v1498_v38, 5  ;;  %v744_v43 = vperm.slane %v1498_v38, 6 }
 0x15c   :  { %v681_v18 = vmul.f32 0.125, %v673_v9  ;;  %v684_v21 = vmul.f32 %v1634_v8, %v1634_v8  ;;  %v680_v26 = vmul.f32 0.125, %v667_v6  ;;  %v683_v30 = vmul.f32 %v1642_v14, %v1642_v14 }
 0x15d   :  { %v654_v1 = vrot.slane %v653_v15, 1  ;;  %v677_v0 = vadd.f32 %v676_v17, %v675_v62  ;;  %860 = vmatpush.msrb.mxu1 %v788_v58  ;;  %v693_v59 = vsub.f32 %v1555_v20, %v1634_v8  ;;  %v743_v60 = vperm.slane %v1498_v38, 2 }
 0x15e   :  { %v687_v2 = vsub.f32 %v681_v18, %v684_v21  ;;  %v686_v37 = vsub.f32 %v680_v26, %v683_v30  ;;  %v738_v63 = vperm.slane %v732_v51, 1  ;;  %v692_v9 = vsub.f32 %v1553_v13, %v1642_v14 }
 0x15f   :  { %v655_v35 = vadd.f32 %v654_v1, %v653_v15  ;;  %v678_v31 = vrot.slane %v677_v0, 1  ;;  %v750_v19 = vperm.slane %v744_v43, 2  ;;  %v733_v20 = vperm.slane %v1517_v54, 1 }
 0x160   :  { %v690_v40 = vmax.f32 %v687_v2, 0.0  ;;  %v689_v3 = vmax.f32 %v686_v37, 0.0  ;;  %v749_v8 = vperm.slane %v743_v60, 2  ;;  %v745_v26 = vperm.slane %v1517_v54, 2  ;;  %v916_v54 = vld [vmem:[%s1752_s5 + $0x58] sm:$0xff] }
 0x161   :  { %v1669_v7 = vmul.f32 0.125, %v655_v35  ;;  %v679_v53 = vadd.f32 %v678_v31, %v677_v0  ;;  %v739_v28 = vperm.slane %v733_v20, 1  ;;  %v915_v31 = vld [vmem:[%s1752_s5 + $0x50] sm:$0xff]  ;;  %925 = vmatpush.msrb.mxu2 %v916_v54  ;;  %v912_v37 = vld [vmem:[%s1752_s5 + $0x38] sm:$0xff] }
 0x162   :  { %v696_v48 = vadd.f32 1e-05, %v690_v40  ;;  %v695_v42 = vadd.f32 1e-05, %v689_v3  ;;  %v751_v32 = vperm.slane %v745_v26, 2  ;;  %v911_v40 = vld [vmem:[%s1752_s5 + $0x30] sm:$0xff] }
 0x163   :  { %v682_v5 = vmul.f32 0.125, %v679_v53  ;;  %v685_v41 = vmul.f32 %v1669_v7, %v1669_v7  ;;  %v694_v13 = vsub.f32 %v1598_v52, %v1669_v7  ;;  %v914_v52 = vld [vmem:[%s1752_s5 + $0x48] sm:$0xff]  ;;  %926 = vmatpush.msrb.mxu2 %v915_v31  ;;  %v909_v53 = vld [vmem:[%s1752_s5 + $0x20] sm:$0xff]  ;;  %v908_v3 = vld [vmem:[%s1752_s5 + $0x18] sm:$0xff] }
 0x164   :  { %1099 = vrsqrt.f32 %v696_v48  ;;  %vm714_vm14 = vweird.f32 %v696_v48  ;;  %vm704_vm15 = vweird.f32 %v695_v42  ;;  %v910_v7 = vld [vmem:[%s1752_s5 + $0x28] sm:$0xff] }
 0x165   :  { %v688_v46 = vsub.f32 %v682_v5, %v685_v41  ;;  %1101 = vrsqrt.f32 %v695_v42  ;;  %927 = vmatpush.msrb.mxu2 %v914_v52  ;;  %v906_v5 = vld [vmem:[%s1752_s5 + $0x8] sm:$0xff] }
 0x167   :  { %v691_v44 = vmax.f32 %v688_v46, 0.0  ;;  %928 = vmatpush.msrb.mxu2 %v913_v36 }
 0x169   :  { %v697_v47 = vadd.f32 1e-05, %v691_v44  ;;  %929 = vmatpush.msrb.mxu2 %v912_v37 }
 0x16a   :  { %v1100_v25 = vpop.eup %1099 }
 0x16b   :  { %v1102_v27 = vpop.eup %1101  ;;  %1103 = vrsqrt.f32 %v697_v47  ;;  %v709_v4 = vmul.f32 %v1100_v25, %v696_v48  ;;  %vm715_vm12 = vweird.f32 %v1100_v25  ;;  %vm724_vm7 = vweird.f32 %v697_v47  ;;  %930 = vmatpush.msrb.mxu2 %v911_v40  ;;  %v755_v48 = vld [vmem:[%s1753_s4] sm:$0x7] }
 0x16c   :  { %v699_v22 = vmul.f32 %v1102_v27, %v695_v42  ;;  %vm705_vm13 = vweird.f32 %v1102_v27  ;;  %vm716_vm0 = vmor %vm714_vm14, %vm715_vm12  ;;  %v804_v41 = vperm.slane %v755_v48, 0  ;;  %v905_v42 = vld [vmem:[%s1752_s5] sm:$0xff] }
 0x16d   :  { %v710_v29 = vmul.f32 %v1100_v25, %v709_v4  ;;  %vm706_vm4 = vmor %vm704_vm15, %vm705_vm13  ;;  %931 = vmatpush.msrb.mxu2 %v910_v7  ;;  %vm990_vm13 = vcmask 105568  }
 0x16e   :  { %v700_v49 = vmul.f32 %v1102_v27, %v699_v22 }
 0x16f   :  { %v711_v50 = vmul.f32 0.5, %v710_v29  ;;  %932 = vmatpush.msrb.mxu2 %v909_v53 }
 0x170   :  { %v701_v16 = vmul.f32 0.5, %v700_v49 }
 0x171   :  { %v1104_v10 = vpop.eup %1103  ;;  %v712_v45 = vsub.f32 1.5, %v711_v50  ;;  %933 = vmatpush.msrb.mxu2 %v908_v3 }
 0x172   :  { %v702_v56 = vsub.f32 1.5, %v701_v16  ;;  %v719_v57 = vmul.f32 %v1104_v10, %v697_v47  ;;  %vm725_vm6 = vweird.f32 %v1104_v10 }
 0x173   :  { %v713_v61 = vmul.f32 %v1100_v25, %v712_v45  ;;  %vm726_vm8 = vmor %vm724_vm7, %vm725_vm6  ;;  %934 = vmatpush.msrb.mxu2 %v907_v39 }
 0x174   :  { %v703_v62 = vmul.f32 %v1102_v27, %v702_v56  ;;  %v720_v6 = vmul.f32 %v1104_v10, %v719_v57 }
 0x175   :  { %v717_v12 = vsel %vm716_vm0, %v1100_v25, %v713_v61  ;;  %935 = vmatpush.msrb.mxu2 %v906_v5 }
 0x176   :  { %v707_v15 = vsel %vm706_vm4, %v1102_v27, %v703_v62  ;;  %v729_v17 = vmul.f32 %v717_v12, %v693_v59  ;;  %v721_v18 = vmul.f32 0.5, %v720_v6 }
 0x177   :  { %v728_v38 = vmul.f32 %v707_v15, %v692_v9  ;;  %936 = vmatpush.msrb.mxu2 %v905_v42 }
 0x178   :  { %v741_v21 = vmul.f32 %v738_v63, %v729_v17  ;;  %v722_v23 = vsub.f32 1.5, %v721_v18 }
 0x179   :  { %v740_v24 = vmul.f32 %v737_v11, %v728_v38  ;;  %v900_v38 = vperm.slane %v755_v48, 1 }
 0x17a   :  { %v753_v1 = vadd.f32 %v750_v19, %v741_v21  ;;  %v723_v0 = vmul.f32 %v1104_v10, %v722_v23  ;;  %v902_v23 = vperm.slane %v755_v48, 2 }
 0x17b   :  { %v752_v14 = vadd.f32 %v749_v8, %v740_v24 }
 0x17c   :  { %841 = vmatmul.f32.vlgmr.msrb.gmra.mxu0 %v753_v1  ;;  %v727_v30 = vsel %vm726_vm8, %v1104_v10, %v723_v0  ;;  %v904_v0 = vld [vmem:[%s1755_s6] sm:$0x7] }
 0x17d   :  { %821 = vmatmul.f32.vlgmr.msra.gmra.mxu3 %v752_v14  ;;  %v730_v2 = vmul.f32 %v727_v30, %v694_v13  ;;  %v917_v13 = vperm.slane %v904_v0, 0 }
 0x17f   :  { %v742_v33 = vmul.f32 %v739_v28, %v730_v2 }
 0x181   :  { %v754_v35 = vadd.f32 %v751_v32, %v742_v33 }
 0x183   :  { %861 = vmatmul.f32.vlgmr.msrb.gmra.mxu1 %v754_v35 }
 0x1f9   :  { %v842_v58 = vpop.f32.mrf.mxu0 }
 0x200   :  { %v822_v34 = vpop.f32.mrf.mxu3  ;;  %v862_v47 = vpop.f32.mrf.mxu1 }
 0x201   :  { %v823_v46 = vadd.f32 %v822_v34, %v804_v41  ;;  %v1082_v41 = vld [vmem:[%s1754_s7] ss:$0 sm:$0xff]  ;;  %s1118_s7 = smov 125  }
 0x202   :  { %1024 = vrot.lane.b32.xlu1 %v1082_v41, %s1115_s1  ;;  %1028 = vrot.lane.b32.xlu2 %v1082_v41, %s1116_s10 }
 0x203   :  { %v843_v44 = vadd.f32 %v842_v58, %v823_v46 }
 0x205   :  { %v863_v25 = vadd.f32 %v862_v47, %v843_v44 }
 0x207   :  { %v865_v27 = vmax.f32 %v863_v25, 0.0 }
 0x209   :  { %v875_v4 = vmul.f32 %v865_v27, %v865_v27  ;;  %v867_v22 = vsel %vm866_vm1, %v865_v27, 0.0 }
 0x20a   :  { %v868_v29 = vrot.slane %v867_v22, 4  ;;  %1036 = vrot.lane.b32.xlu2 %v1082_v41, %s1117_s11 }
 0x20b   :  { %v876_v49 = vsel %vm866_vm1, %v875_v4, 0.0 }
 0x20c   :  { %v869_v50 = vadd.f32 %v868_v29, %v867_v22  ;;  %v877_v16 = vrot.slane %v876_v49, 4 }
 0x20e   :  { %v870_v51 = vrot.slane %v869_v50, 2  ;;  %v878_v10 = vadd.f32 %v877_v16, %v876_v49  ;;  %v976_v49 = vperm.slane %v904_v0, 1 }
 0x210   :  { %v871_v55 = vadd.f32 %v870_v51, %v869_v50  ;;  %v879_v45 = vrot.slane %v878_v10, 2 }
 0x212   :  { %v872_v56 = vrot.slane %v871_v55, 1  ;;  %v880_v43 = vadd.f32 %v879_v45, %v878_v10  ;;  %v978_v10 = vperm.slane %v904_v0, 2 }
 0x214   :  { %v873_v57 = vadd.f32 %v872_v56, %v871_v55  ;;  %v881_v59 = vrot.slane %v880_v43, 1 }
 0x216   :  { %v874_v60 = vmul.f32 0.125, %v873_v57  ;;  %v882_v61 = vadd.f32 %v881_v59, %v880_v43 }
 0x218   :  { %v883_v62 = vmul.f32 0.125, %v882_v61  ;;  %v884_v63 = vmul.f32 %v874_v60, %v874_v60  ;;  %v887_v8 = vsub.f32 %v865_v27, %v874_v60 }
 0x21a   :  { %v885_v6 = vsub.f32 %v883_v62, %v884_v63 }
 0x21c   :  { %v886_v9 = vmax.f32 %v885_v6, 0.0 }
 0x21e   :  { %v888_v11 = vadd.f32 1e-05, %v886_v9 }
 0x220   :  { %1105 = vrsqrt.f32 %v888_v11  ;;  %vm895_vm3 = vweird.f32 %v888_v11 }
 0x226   :  { %v1106_v12 = vpop.eup %1105 }
 0x227   :  { %v890_v15 = vmul.f32 %v1106_v12, %v888_v11  ;;  %vm896_vm2 = vweird.f32 %v1106_v12 }
 0x228   :  { %vm897_vm9 = vmor %vm895_vm3, %vm896_vm2 }
 0x229   :  { %v891_v17 = vmul.f32 %v1106_v12, %v890_v15 }
 0x22b   :  { %v892_v19 = vmul.f32 0.5, %v891_v17 }
 0x22d   :  { %v893_v18 = vsub.f32 1.5, %v892_v19 }
 0x22f   :  { %v894_v20 = vmul.f32 %v1106_v12, %v893_v18 }
 0x231   :  { %v898_v21 = vsel %vm897_vm9, %v1106_v12, %v894_v20 }
 0x232   :  { %v899_v24 = vmul.f32 %v898_v21, %v887_v8 }
 0x234   :  { %v901_v26 = vmul.f32 %v900_v38, %v899_v24 }
 0x236   :  { %v903_v1 = vadd.f32 %v902_v23, %v901_v26 }
 0x238   :  { %1075 = vmatmul.msk.f32.vlgmr.msrb.gmra.mxu2 %vm866_vm1, %v903_v1  ;;  %vm1063_vm1 = vcmask 7168  }
 0x2bb   :  { %v938_v14 = vpop.f32.mrf.mxu2 }
 0x2bc   :  { %v939_v28 = vadd.f32 %v938_v14, %v917_v13 }
 0x2be   :  { %v941_v30 = vmax.f32 %v939_v28, 0.0 }
 0x2c0   :  { %v951_v2 = vmul.f32 %v941_v30, %v941_v30  ;;  %v943_v32 = vsel %vm942_vm5, %v941_v30, 0.0 }
 0x2c1   :  { %v944_v33 = vrot.slane %v943_v32, 4 }
 0x2c2   :  { %v952_v35 = vsel %vm942_vm5, %v951_v2, 0.0 }
 0x2c3   :  { %v945_v54 = vadd.f32 %v944_v33, %v943_v32  ;;  %v953_v31 = vrot.slane %v952_v35, 4  ;;  %v1029_v32 = vpop.permute.xlu2 %1028 }
 0x2c5   :  { %v946_v52 = vrot.slane %v945_v54, 2  ;;  %v954_v36 = vadd.f32 %v953_v31, %v952_v35  ;;  %v1025_v31 = vpop.permute.xlu1 %1024 }
 0x2c7   :  { %v947_v37 = vadd.f32 %v946_v52, %v945_v54  ;;  %v955_v40 = vrot.slane %v954_v36, 2 }
 0x2c9   :  { %v948_v7 = vrot.slane %v947_v37, 1  ;;  %v956_v53 = vadd.f32 %v955_v40, %v954_v36 }
 0x2cb   :  { %v949_v3 = vadd.f32 %v948_v7, %v947_v37  ;;  %v957_v39 = vrot.slane %v956_v53, 1 }
 0x2cd   :  { %v950_v48 = vmul.f32 0.125, %v949_v3  ;;  %v958_v5 = vadd.f32 %v957_v39, %v956_v53  ;;  %v1037_v53 = vpop.permute.xlu2 %1036 }
 0x2cf   :  { %v959_v42 = vmul.f32 0.125, %v958_v5  ;;  %v960_v34 = vmul.f32 %v950_v48, %v950_v48  ;;  %v963_v50 = vsub.f32 %v941_v30, %v950_v48 }
 0x2d1   :  { %v961_v46 = vsub.f32 %v959_v42, %v960_v34 }
 0x2d3   :  { %v962_v58 = vmax.f32 %v961_v46, 0.0 }
 0x2d5   :  { %v964_v44 = vadd.f32 1e-05, %v962_v58 }
 0x2d7   :  { %1107 = vrsqrt.f32 %v964_v44  ;;  %vm971_vm11 = vweird.f32 %v964_v44 }
 0x2dd   :  { %v1108_v47 = vpop.eup %1107 }
 0x2de   :  { %v966_v25 = vmul.f32 %v1108_v47, %v964_v44  ;;  %vm972_vm10 = vweird.f32 %v1108_v47 }
 0x2df   :  { %vm973_vm12 = vmor %vm971_vm11, %vm972_vm10 }
 0x2e0   :  { %v967_v27 = vmul.f32 %v1108_v47, %v966_v25 }
 0x2e2   :  { %v968_v4 = vmul.f32 0.5, %v967_v27 }
 0x2e4   :  { %v969_v22 = vsub.f32 1.5, %v968_v4 }
 0x2e6   :  { %v970_v29 = vmul.f32 %v1108_v47, %v969_v22 }
 0x2e8   :  { %v974_v16 = vsel %vm973_vm12, %v1108_v47, %v970_v29 }
 0x2e9   :  { %v975_v51 = vmul.f32 %v974_v16, %v963_v50 }
 0x2eb   :  { %v977_v55 = vmul.f32 %v976_v49, %v975_v51 }
 0x2ed   :  { %v979_v45 = vadd.f32 %v978_v10, %v977_v55 }
 0x2ef   :  { %v984_v56 = vmul.f32 %v1082_v41, %v979_v45 }
 0x2f1   :  { %v985_v43 = vsel %vm942_vm5, %v984_v56, 0.0 }
 0x2f2   :  { %986 = vadd.xlane.f32.xlu0 %v985_v43 }
 0x306   :  { %1032 = vrot.lane.b32.xlu0 %v1082_v41, %s1118_s7 }
 0x365   :  { %v987_v57 = vpop.xlane.xlu0 %986 }
 0x366   :  { %v988_v59 = vadd.f32 %v1082_v41, %v987_v57 }
 0x368   :  { %v989_v60 = vmax.f32 %v988_v59, 0.0 }
 0x36a   :  { %v991_v61 = vsel %vm990_vm13, %v989_v60, 0.0  ;;  %v999_v62 = vmul.f32 %v989_v60, %v989_v60 }
 0x36b   :  { %v992_v63 = vrot.slane %v991_v61, 4 }
 0x36c   :  { %v1000_v6 = vsel %vm990_vm13, %v999_v62, 0.0 }
 0x36d   :  { %v993_v9 = vadd.f32 %v992_v63, %v991_v61  ;;  %v1001_v11 = vrot.slane %v1000_v6, 4 }
 0x36f   :  { %v994_v12 = vrot.slane %v993_v9, 2  ;;  %v1002_v15 = vadd.f32 %v1001_v11, %v1000_v6 }
 0x371   :  { %v995_v17 = vadd.f32 %v994_v12, %v993_v9  ;;  %v1003_v19 = vrot.slane %v1002_v15, 2 }
 0x373   :  { %v1004_v18 = vadd.f32 %v1003_v19, %v1002_v15  ;;  %v996_v20 = vrot.slane %v995_v17, 1 }
 0x375   :  { %v1005_v38 = vrot.slane %v1004_v18, 1  ;;  %v997_v8 = vadd.f32 %v996_v20, %v995_v17 }
 0x377   :  { %v1006_v21 = vadd.f32 %v1005_v38, %v1004_v18  ;;  %v998_v23 = vmul.f32 0.125, %v997_v8 }
 0x378   :  { %v1033_v40 = vpop.permute.xlu0 %1032 }
 0x379   :  { %v1007_v24 = vmul.f32 0.125, %v1006_v21  ;;  %v1008_v26 = vmul.f32 %v998_v23, %v998_v23  ;;  %v1011_v54 = vsub.f32 %v989_v60, %v998_v23 }
 0x37b   :  { %v1009_v1 = vsub.f32 %v1007_v24, %v1008_v26 }
 0x37d   :  { %v1010_v0 = vmax.f32 %v1009_v1, 0.0 }
 0x37f   :  { %v1012_v13 = vadd.f32 1e-05, %v1010_v0 }
 0x381   :  { %1109 = vrsqrt.f32 %v1012_v13  ;;  %vm1019_vm15 = vweird.f32 %v1012_v13 }
 0x387   :  { %v1110_v14 = vpop.eup %1109 }
 0x388   :  { %v1014_v28 = vmul.f32 %v1110_v14, %v1012_v13  ;;  %vm1020_vm14 = vweird.f32 %v1110_v14 }
 0x389   :  { %vm1021_vm0 = vmor %vm1019_vm15, %vm1020_vm14 }
 0x38a   :  { %v1015_v30 = vmul.f32 %v1110_v14, %v1014_v28 }
 0x38c   :  { %v1016_v2 = vmul.f32 0.5, %v1015_v30 }
 0x38e   :  { %v1017_v33 = vsub.f32 1.5, %v1016_v2 }
 0x390   :  { %v1018_v35 = vmul.f32 %v1110_v14, %v1017_v33 }
 0x392   :  { %v1022_v52 = vsel %vm1021_vm0, %v1110_v14, %v1018_v35 }
 0x393   :  { %v1023_v36 = vmul.f32 %v1022_v52, %v1011_v54 }
 0x395   :  { %v1027_v37 = vmul.f32 %v1025_v31, %v1023_v36 }
 0x397   :  { %v1031_v7 = vadd.f32 %v1029_v32, %v1027_v37 }
 0x399   :  { %v1035_v3 = vmul.f32 %v1033_v40, %v1031_v7 }
 0x39b   :  { %v1039_v39 = vadd.f32 %v1037_v53, %v1035_v3 }
 0x39d   :  { %v1076_v48 = vmul.f32 -1.442695, %v1039_v39 }
 0x39f   :  { %1111 = vpow2.f32 %v1076_v48 }
 0x3a5   :  { %v1112_v5 = vpop.eup %1111 }
 0x3a6   :  { %v1043_v41 = vadd.f32 1.0, %v1112_v5 }
 0x3a8   :  { %1113 = vrcp.f32 %v1043_v41  ;;  %v1055_v58 = vand.u32 2147483648, %v1043_v41  ;;  %v1053_v47 = vand.u32 2147483647, %v1043_v41  ;;  %vm1049_vm6 = vweird.f32 %v1043_v41 }
 0x3aa   :  { %v1056_v27 = vor.u32 1.1754944e-38, %v1055_v58  ;;  %vm1054_vm8 = vcmp.eq.f32.partialorder %v1053_v47, 8.507059e+37 }
 0x3ae   :  { %v1114_v42 = vpop.eup %1113 }
 0x3af   :  { %v1045_v34 = vmul.f32 %v1114_v42, %v1043_v41  ;;  %vm1050_vm4 = vweird.f32 %v1114_v42 }
 0x3b0   :  { %vm1051_vm7 = vmor %vm1049_vm6, %vm1050_vm4 }
 0x3b1   :  { %v1046_v46 = vsub.f32 1.0, %v1045_v34 }
 0x3b3   :  { %v1047_v44 = vmul.f32 %v1114_v42, %v1046_v46 }
 0x3b5   :  { %v1048_v25 = vadd.f32 %v1114_v42, %v1047_v44 }
 0x3b7   :  { %v1052_v4 = vsel %vm1051_vm7, %v1114_v42, %v1048_v25 }
 0x3b8   :  { %v1057_v22 = vsel %vm1054_vm8, %v1056_v27, %v1052_v4 }
 0x3b9   :  { %1060 = vrot.lane.b32.xlu1 %v1057_v22, %s1119_s12 }
 0x42b   :  { %v1061_v29 = vpop.permute.xlu1 %1060 }
 0x42c   :  { %1064 = vst.msk [vmem:[%s1756_s8] sm:$0xff] %vm1063_vm1, %v1061_v29 }

</bundles_post_ra>
